<compile_context>
chip_gen: v7x
topology: tpu7x:2x2x1
jax: 0.10.0
libtpu: 0.0.40
codegen_flags: <defaults>
</compile_context>

<pallas_src>
import functools
import math

import jax
import jax.numpy as jnp
from jax.experimental import pallas as pl
from jax.experimental.pallas import tpu as pltpu


# TODO(synk): exact erf-based "gelu" (transformers ACT2FN["gelu"]) is mapped to
# the tanh approximation to stay on Mosaic-supported transcendentals (tanh on
# the EUP); swap in an erf lowering if bit-exact GELU is required.
_ACTIVATIONS = {
    "gelu": lambda x: jax.nn.gelu(x, approximate=True),
    "gelu_new": lambda x: jax.nn.gelu(x, approximate=True),
    "gelu_pytorch_tanh": lambda x: jax.nn.gelu(x, approximate=True),
    "relu": jax.nn.relu,
    "silu": jax.nn.silu,
}


def _sma_mlp_kernel_bias(x_ref, w1_ref, b1_ref, w2_ref, b2_ref, o_ref, *,
                         act, compute_dtype):
    # x_ref:  (T, H)  row tile        w1_ref: (H, WH)   b1_ref: (1, WH)
    # w2_ref: (WH, H)                 b2_ref: (1, H)    o_ref:  (T, H)
    x = x_ref[...].astype(compute_dtype)                 # bf16 MXU operand
    h = jnp.dot(x, w1_ref[...], preferred_element_type=jnp.float32)
    h = h + b1_ref[...]                                  # f32 bias add
    h = act(h)                                           # activation in f32
    h = h.astype(compute_dtype)                          # downcast after act
    y = jnp.dot(h, w2_ref[...], preferred_element_type=jnp.float32)
    y = y + b2_ref[...]
    # Dropout is identity at inference time.
    # TODO(synk): training-mode dropout (pltpu.prng_random_bits mask) not wired.
    o_ref[...] = y.astype(o_ref.dtype)


def _sma_mlp_kernel_nobias(x_ref, w1_ref, w2_ref, o_ref, *, act, compute_dtype):
    x = x_ref[...].astype(compute_dtype)
    h = jnp.dot(x, w1_ref[...], preferred_element_type=jnp.float32)
    h = act(h)
    h = h.astype(compute_dtype)
    y = jnp.dot(h, w2_ref[...], preferred_element_type=jnp.float32)
    o_ref[...] = y.astype(o_ref.dtype)


def sma_mlp(hidden_states, w1, b1, w2, b2, *, hidden_act="gelu",
            tile_rows=512, compute_dtype=jnp.bfloat16):
    """Fused SMAMLP forward: act(x @ w1 + b1) @ w2 + b2 (dropout = identity).

    hidden_states: [..., H]
    w1: [H, WH]  (nn.Linear(H, WH).weight transposed),  b1: [WH] or None
    w2: [WH, H]  (nn.Linear(WH, H).weight transposed),  b2: [H]  or None
    compute_dtype: MXU operand dtype (bf16 default; f32 accumulation always).
    """
    act = _ACTIVATIONS[hidden_act] if isinstance(hidden_act, str) else hidden_act
    orig_shape = hidden_states.shape
    H = orig_shape[-1]
    WH = w1.shape[1]
    assert w1.shape == (H, WH), (w1.shape, H, WH)
    assert w2.shape == (WH, H), (w2.shape, WH, H)
    has_bias = b1 is not None
    assert (b2 is not None) == has_bias

    rows = math.prod(orig_shape[:-1])
    x2 = hidden_states.reshape(rows, H)

    # Weights cast once (resident across the grid); biases stay f32 so the
    # bias add happens on the f32 accumulator.
    w1c = w1.astype(compute_dtype)
    w2c = w2.astype(compute_dtype)

    # ---- Row tile selection ----
    t = min(tile_rows, rows)
    if rows >= 16:
        # Keep >= 2 grid steps so both v7x TensorCores get work (no effect on
        # v5e/v6e single-TC chips beyond extra pipelining).
        t = min(t, -(-rows // 2))
    gran = 128 if t >= 128 else 8          # 128 = native MXU M granularity
    t = -(-t // gran) * gran
    grid = (pl.cdiv(rows, t),)             # boundary block clipped by Pallas

    x_spec = pl.BlockSpec((t, H), lambda i: (i, 0))
    o_spec = pl.BlockSpec((t, H), lambda i: (i, 0))

    x_bytes = x2.dtype.itemsize
    o_bytes = jnp.dtype(hidden_states.dtype).itemsize
    w_bytes = jnp.dtype(compute_dtype).itemsize

    def _vmem_limit(weight_bufs):
        per_step = (
            2 * t * H * x_bytes                                  # x (dbl-buf)
            + 2 * t * H * o_bytes                                # out (dbl-buf)
            + weight_bufs * (H * WH + WH * H) * w_bytes          # weights
            + (weight_bufs * (WH + H) * 4 if has_bias else 0)    # biases (f32)
            + t * WH * 4 + t * WH * w_bytes                      # f32 act + cast
            + t * H * 4                                          # f32 result
        )
        # ~1.5x real footprint; floor gives Mosaic-internal scratch headroom,
        # cap keeps the setting valid on v7x (64 MiB physical per TC).
        return int(min(64 * 1024 * 1024,
                       max(4 * 1024 * 1024, (3 * per_step) // 2)))

    cost = pl.CostEstimate(
        flops=4 * rows * H * WH,                                 # two matmuls
        transcendentals=rows * WH,                               # tanh in GELU
        bytes_accessed=(rows * H * (x_bytes + o_bytes)
                        + (H * WH + WH * H) * w_bytes
                        + ((WH + H) * 4 if has_bias else 0)),
    )

    def _call(single_buffer_weights):
        if single_buffer_weights:
            def resident(shape):
                return pl.BlockSpec(shape, lambda i: (0, 0),
                                    pipeline_mode=pl.Buffered(1))
            weight_bufs = 1
        else:
            def resident(shape):
                return pl.BlockSpec(shape, lambda i: (0, 0))
            weight_bufs = 2

        if has_bias:
            kernel = functools.partial(_sma_mlp_kernel_bias, act=act,
                                       compute_dtype=compute_dtype)
            in_specs = [x_spec, resident((H, WH)), resident((1, WH)),
                        resident((WH, H)), resident((1, H))]
            operands = (x2, w1c,
                        jnp.asarray(b1, jnp.float32).reshape(1, WH),
                        w2c,
                        jnp.asarray(b2, jnp.float32).reshape(1, H))
        else:
            kernel = functools.partial(_sma_mlp_kernel_nobias, act=act,
                                       compute_dtype=compute_dtype)
            in_specs = [x_spec, resident((H, WH)), resident((WH, H))]
            operands = (x2, w1c, w2c)

        return pl.pallas_call(
            kernel,
            out_shape=jax.ShapeDtypeStruct((rows, H), hidden_states.dtype),
            grid=grid,
            in_specs=in_specs,
            out_specs=o_spec,
            compiler_params=pltpu.CompilerParams(
                dimension_semantics=("parallel",),       # megacore-shardable
                vmem_limit_bytes=_vmem_limit(weight_bufs),
            ),
            cost_estimate=cost,
        )(*operands)

    try:
        out = _call(single_buffer_weights=True)
    except Exception:
        # TODO(synk): some jax versions reject pipeline_mode on the outer
        # pallas_call; fall back to default double-buffered resident weights.
        out = _call(single_buffer_weights=False)

    return out.reshape(orig_shape)


def _reference(x, w1, b1, w2, b2, hidden_act="gelu"):
    act = _ACTIVATIONS[hidden_act]
    hi = jax.lax.Precision.HIGHEST
    h = jnp.einsum("...h,hw->...w", x, w1, precision=hi)
    if b1 is not None:
        h = h + b1
    h = act(h)
    y = jnp.einsum("...w,wh->...h", h, w2, precision=hi)
    if b2 is not None:
        y = y + b2
    return y


if __name__ == "__main__":
    # Small SMAMLP config: input_size=128 (lane-dense), widening_factor=4,
    # bias=True, hidden_act="gelu", batch=2, seq=8.
    B, S = 2, 8
    INPUT_SIZE = 128
    WIDENING = 4
    WH = WIDENING * INPUT_SIZE

    key = jax.random.PRNGKey(0)
    kx, kw1, kb1, kw2, kb2 = jax.random.split(key, 5)

    x = jax.random.normal(kx, (B, S, INPUT_SIZE), dtype=jnp.float32)
    # nn.Linear(H, WH): weight [WH, H]; stored transposed as [H, WH].
    w1 = jax.random.normal(kw1, (INPUT_SIZE, WH), jnp.float32) / math.sqrt(INPUT_SIZE)
    b1 = 0.1 * jax.random.normal(kb1, (WH,), jnp.float32)
    # nn.Linear(WH, H): weight [H, WH]; stored transposed as [WH, H].
    w2 = jax.random.normal(kw2, (WH, INPUT_SIZE), jnp.float32) / math.sqrt(WH)
    b2 = 0.1 * jax.random.normal(kb2, (INPUT_SIZE,), jnp.float32)

    ref = _reference(x, w1, b1, w2, b2, hidden_act="gelu")

    # Default (bf16 MXU operand) path.  bf16 operand rounding widens the error
    # vs the f32 PyTorch reference (accumulation is still f32), so the
    # documented tolerance here is 5e-2.
    out_bf16 = jax.block_until_ready(sma_mlp(x, w1, b1, w2, b2, hidden_act="gelu"))
    assert out_bf16.shape == x.shape
    err_bf16 = float(jnp.max(jnp.abs(out_bf16 - ref)))
    assert jnp.allclose(out_bf16, ref, atol=5e-2, rtol=5e-2), err_bf16

    # f32 compute path (tight check) on a row count that does NOT divide the
    # tile, exercising the clipped/masked boundary block (no host pad/slice).
    x_rag = jax.random.normal(kx, (3, 7, INPUT_SIZE), dtype=jnp.float32)
    out_f32 = jax.block_until_ready(
        sma_mlp(x_rag, w1, b1, w2, b2, hidden_act="gelu",
                compute_dtype=jnp.float32))
    ref_rag = _reference(x_rag, w1, b1, w2, b2, hidden_act="gelu")
    err_f32 = float(jnp.max(jnp.abs(out_f32 - ref_rag)))
    assert jnp.allclose(out_f32, ref_rag, atol=2e-2, rtol=2e-2), err_f32

    # bias=False variant of the module.
    out_nb = jax.block_until_ready(sma_mlp(x, w1, None, w2, None, hidden_act="gelu"))
    ref_nb = _reference(x, w1, None, w2, None, hidden_act="gelu")
    err_nb = float(jnp.max(jnp.abs(out_nb - ref_nb)))
    assert jnp.allclose(out_nb, ref_nb, atol=5e-2, rtol=5e-2), err_nb

    print("KERNEL_OK")
</pallas_src>

<mosaic_0001>
module attributes {stable_mosaic.version = 11 : i64} {
  func.func @_sma_mlp_kernel_bias(%arg0: i32, %arg1: memref<8x128xf32, #tpu.memory_space<vmem>>, %arg2: memref<128x512xbf16, #tpu.memory_space<vmem>>, %arg3: memref<1x512xf32, #tpu.memory_space<vmem>>, %arg4: memref<512x128xbf16, #tpu.memory_space<vmem>>, %arg5: memref<1x128xf32, #tpu.memory_space<vmem>>, %arg6: memref<8x128xf32, #tpu.memory_space<vmem>>) attributes {dimension_semantics = [#tpu.dimension_semantics<parallel>], iteration_bounds = array<i64: 2>, scalar_prefetch = 0 : i64, scratch_operands = 0 : i64, tpu.core_type = #tpu.core_type<tc>, window_params = [{transform_indices = @transform_0, window_bounds = array<i64: 8, 128>}, {pipeline_mode = #tpu.pipeline_mode<synchronous>, transform_indices = @transform_1, window_bounds = array<i64: 128, 512>}, {pipeline_mode = #tpu.pipeline_mode<synchronous>, transform_indices = @transform_2, window_bounds = array<i64: 1, 512>}, {pipeline_mode = #tpu.pipeline_mode<synchronous>, transform_indices = @transform_3, window_bounds = array<i64: 512, 128>}, {pipeline_mode = #tpu.pipeline_mode<synchronous>, transform_indices = @transform_4, window_bounds = array<i64: 1, 128>}, {transform_indices = @transform_5, window_bounds = array<i64: 8, 128>}]} {
    %c0 = arith.constant 0 : index
    %c0_0 = arith.constant 0 : index
    %0 = vector.load %arg1[%c0, %c0_0] : memref<8x128xf32, #tpu.memory_space<vmem>>, vector<8x128xf32>
    %1 = arith.truncf %0 : vector<8x128xf32> to vector<8x128xbf16>
    %c0_1 = arith.constant 0 : index
    %c0_2 = arith.constant 0 : index
    %2 = vector.load %arg2[%c0_1, %c0_2] : memref<128x512xbf16, #tpu.memory_space<vmem>>, vector<128x512xbf16>
    %cst = arith.constant dense<0.000000e+00> : vector<8x512xf32>
    %3 = tpu.matmul %1, %2, %cst {dimension_numbers = #tpu.dot_dimension_numbers<[1], [0], [0], [1], [0, 0, 1, 1], [], []>} : vector<8x128xbf16>, vector<128x512xbf16>, vector<8x512xf32> -> vector<8x512xf32>
    %c0_3 = arith.constant 0 : index
    %c0_4 = arith.constant 0 : index
    %4 = vector.load %arg3[%c0_3, %c0_4] : memref<1x512xf32, #tpu.memory_space<vmem>>, vector<1x512xf32>
    %5 = vector.broadcast %4 : vector<1x512xf32> to vector<8x512xf32>
    %6 = arith.addf %3, %5 : vector<8x512xf32>
    %7 = arith.mulf %6, %6 : vector<8x512xf32>
    %8 = arith.mulf %6, %7 : vector<8x512xf32>
    %cst_5 = arith.constant 4.471500e-02 : f32
    %9 = vector.broadcast %cst_5 : f32 to vector<8x512xf32>
    %10 = arith.mulf %9, %8 : vector<8x512xf32>
    %11 = arith.addf %6, %10 : vector<8x512xf32>
    %cst_6 = arith.constant 0.797884583 : f32
    %12 = vector.broadcast %cst_6 : f32 to vector<8x512xf32>
    %13 = arith.mulf %12, %11 : vector<8x512xf32>
    %14 = math.tanh %13 : vector<8x512xf32>
    %cst_7 = arith.constant 1.000000e+00 : f32
    %15 = vector.broadcast %cst_7 : f32 to vector<8x512xf32>
    %16 = arith.addf %15, %14 : vector<8x512xf32>
    %cst_8 = arith.constant 5.000000e-01 : f32
    %17 = vector.broadcast %cst_8 : f32 to vector<8x512xf32>
    %18 = arith.mulf %17, %16 : vector<8x512xf32>
    %19 = arith.mulf %6, %18 : vector<8x512xf32>
    %20 = arith.truncf %19 : vector<8x512xf32> to vector<8x512xbf16>
    %c0_9 = arith.constant 0 : index
    %c0_10 = arith.constant 0 : index
    %21 = vector.load %arg4[%c0_9, %c0_10] : memref<512x128xbf16, #tpu.memory_space<vmem>>, vector<512x128xbf16>
    %cst_11 = arith.constant dense<0.000000e+00> : vector<8x128xf32>
    %22 = tpu.matmul %20, %21, %cst_11 {dimension_numbers = #tpu.dot_dimension_numbers<[1], [0], [0], [1], [0, 0, 1, 1], [], []>} : vector<8x512xbf16>, vector<512x128xbf16>, vector<8x128xf32> -> vector<8x128xf32>
    %c0_12 = arith.constant 0 : index
    %c0_13 = arith.constant 0 : index
    %23 = vector.load %arg5[%c0_12, %c0_13] : memref<1x128xf32, #tpu.memory_space<vmem>>, vector<1x128xf32>
    %24 = vector.broadcast %23 : vector<1x128xf32> to vector<8x128xf32>
    %25 = arith.addf %22, %24 : vector<8x128xf32>
    %c0_14 = arith.constant 0 : index
    %c0_15 = arith.constant 0 : index
    %26 = vector.load %arg6[%c0_14, %c0_15] : memref<8x128xf32, #tpu.memory_space<vmem>>, vector<8x128xf32>
    tpu.vector_store %arg6[%c0_14, %c0_15], %25 {strides = array<i32>} : memref<8x128xf32, #tpu.memory_space<vmem>>, vector<8x128xf32>,
    return
  }
  func.func @transform_0(%arg0: i32) -> (i32, i32) {
    %c0_i32 = arith.constant 0 : i32
    %c0_i32_0 = arith.constant 0 : i32
    return %arg0, %c0_i32 : i32, i32
  }
  func.func @transform_1(%arg0: i32) -> (i32, i32) {
    %c0_i32 = arith.constant 0 : i32
    %c0_i32_0 = arith.constant 0 : i32
    %c0_i32_1 = arith.constant 0 : i32
    return %c0_i32, %c0_i32_0 : i32, i32
  }
  func.func @transform_2(%arg0: i32) -> (i32, i32) {
    %c0_i32 = arith.constant 0 : i32
    %c0_i32_0 = arith.constant 0 : i32
    %c0_i32_1 = arith.constant 0 : i32
    return %c0_i32, %c0_i32_0 : i32, i32
  }
  func.func @transform_3(%arg0: i32) -> (i32, i32) {
    %c0_i32 = arith.constant 0 : i32
    %c0_i32_0 = arith.constant 0 : i32
    %c0_i32_1 = arith.constant 0 : i32
    return %c0_i32, %c0_i32_0 : i32, i32
  }
  func.func @transform_4(%arg0: i32) -> (i32, i32) {
    %c0_i32 = arith.constant 0 : i32
    %c0_i32_0 = arith.constant 0 : i32
    %c0_i32_1 = arith.constant 0 : i32
    return %c0_i32, %c0_i32_0 : i32, i32
  }
  func.func @transform_5(%arg0: i32) -> (i32, i32) {
    %c0_i32 = arith.constant 0 : i32
    %c0_i32_0 = arith.constant 0 : i32
    return %arg0, %c0_i32 : i32, i32
  }
}

module attributes {stable_mosaic.version = 11 : i64} {
  func.func @_sma_mlp_kernel_bias(%arg0: i32, %arg1: memref<8x128xf32, #tpu.memory_space<vmem>>, %arg2: memref<128x512xbf16, #tpu.memory_space<vmem>>, %arg3: memref<1x512xf32, #tpu.memory_space<vmem>>, %arg4: memref<512x128xbf16, #tpu.memory_space<vmem>>, %arg5: memref<1x128xf32, #tpu.memory_space<vmem>>, %arg6: memref<8x128xf32, #tpu.memory_space<vmem>>) attributes {dimension_semantics = [#tpu.dimension_semantics<parallel>], iteration_bounds = array<i64: 2>, scalar_prefetch = 0 : i64, scratch_operands = 0 : i64, tpu.core_type = #tpu.core_type<tc>, window_params = [{transform_indices = @transform_0, window_bounds = array<i64: 8, 128>}, {pipeline_mode = #tpu.pipeline_mode<synchronous>, transform_indices = @transform_1, window_bounds = array<i64: 128, 512>}, {pipeline_mode = #tpu.pipeline_mode<synchronous>, transform_indices = @transform_2, window_bounds = array<i64: 1, 512>}, {pipeline_mode = #tpu.pipeline_mode<synchronous>, transform_indices = @transform_3, window_bounds = array<i64: 512, 128>}, {pipeline_mode = #tpu.pipeline_mode<synchronous>, transform_indices = @transform_4, window_bounds = array<i64: 1, 128>}, {transform_indices = @transform_5, window_bounds = array<i64: 8, 128>}]} {
    %c0 = arith.constant 0 : index
    %c0_0 = arith.constant 0 : index
    %0 = vector.load %arg1[%c0, %c0_0] : memref<8x128xf32, #tpu.memory_space<vmem>>, vector<8x128xf32>
    %1 = arith.truncf %0 : vector<8x128xf32> to vector<8x128xbf16>
    %c0_1 = arith.constant 0 : index
    %c0_2 = arith.constant 0 : index
    %2 = vector.load %arg2[%c0_1, %c0_2] : memref<128x512xbf16, #tpu.memory_space<vmem>>, vector<128x512xbf16>
    %cst = arith.constant dense<0.000000e+00> : vector<8x512xf32>
    %3 = tpu.matmul %1, %2, %cst {dimension_numbers = #tpu.dot_dimension_numbers<[1], [0], [0], [1], [0, 0, 1, 1], [], []>} : vector<8x128xbf16>, vector<128x512xbf16>, vector<8x512xf32> -> vector<8x512xf32>
    %c0_3 = arith.constant 0 : index
    %c0_4 = arith.constant 0 : index
    %4 = vector.load %arg3[%c0_3, %c0_4] : memref<1x512xf32, #tpu.memory_space<vmem>>, vector<1x512xf32>
    %5 = vector.broadcast %4 : vector<1x512xf32> to vector<8x512xf32>
    %6 = arith.addf %3, %5 : vector<8x512xf32>
    %7 = arith.mulf %6, %6 : vector<8x512xf32>
    %8 = arith.mulf %6, %7 : vector<8x512xf32>
    %cst_5 = arith.constant 4.471500e-02 : f32
    %9 = vector.broadcast %cst_5 : f32 to vector<8x512xf32>
    %10 = arith.mulf %9, %8 : vector<8x512xf32>
    %11 = arith.addf %6, %10 : vector<8x512xf32>
    %cst_6 = arith.constant 0.797884583 : f32
    %12 = vector.broadcast %cst_6 : f32 to vector<8x512xf32>
    %13 = arith.mulf %12, %11 : vector<8x512xf32>
    %14 = math.tanh %13 : vector<8x512xf32>
    %cst_7 = arith.constant 1.000000e+00 : f32
    %15 = vector.broadcast %cst_7 : f32 to vector<8x512xf32>
    %16 = arith.addf %15, %14 : vector<8x512xf32>
    %cst_8 = arith.constant 5.000000e-01 : f32
    %17 = vector.broadcast %cst_8 : f32 to vector<8x512xf32>
    %18 = arith.mulf %17, %16 : vector<8x512xf32>
    %19 = arith.mulf %6, %18 : vector<8x512xf32>
    %20 = arith.truncf %19 : vector<8x512xf32> to vector<8x512xbf16>
    %c0_9 = arith.constant 0 : index
    %c0_10 = arith.constant 0 : index
    %21 = vector.load %arg4[%c0_9, %c0_10] : memref<512x128xbf16, #tpu.memory_space<vmem>>, vector<512x128xbf16>
    %cst_11 = arith.constant dense<0.000000e+00> : vector<8x128xf32>
    %22 = tpu.matmul %20, %21, %cst_11 {dimension_numbers = #tpu.dot_dimension_numbers<[1], [0], [0], [1], [0, 0, 1, 1], [], []>} : vector<8x512xbf16>, vector<512x128xbf16>, vector<8x128xf32> -> vector<8x128xf32>
    %c0_12 = arith.constant 0 : index
    %c0_13 = arith.constant 0 : index
    %23 = vector.load %arg5[%c0_12, %c0_13] : memref<1x128xf32, #tpu.memory_space<vmem>>, vector<1x128xf32>
    %24 = vector.broadcast %23 : vector<1x128xf32> to vector<8x128xf32>
    %25 = arith.addf %22, %24 : vector<8x128xf32>
    %c0_14 = arith.constant 0 : index
    %c0_15 = arith.constant 0 : index
    %26 = vector.load %arg6[%c0_14, %c0_15] : memref<8x128xf32, #tpu.memory_space<vmem>>, vector<8x128xf32>
    tpu.vector_store %arg6[%c0_14, %c0_15], %25 {strides = array<i32>} : memref<8x128xf32, #tpu.memory_space<vmem>>, vector<8x128xf32>,
    return
  }
  func.func @transform_0(%arg0: i32) -> (i32, i32) {
    %c0_i32 = arith.constant 0 : i32
    %c0_i32_0 = arith.constant 0 : i32
    return %arg0, %c0_i32 : i32, i32
  }
  func.func @transform_1(%arg0: i32) -> (i32, i32) {
    %c0_i32 = arith.constant 0 : i32
    %c0_i32_0 = arith.constant 0 : i32
    %c0_i32_1 = arith.constant 0 : i32
    return %c0_i32, %c0_i32_0 : i32, i32
  }
  func.func @transform_2(%arg0: i32) -> (i32, i32) {
    %c0_i32 = arith.constant 0 : i32
    %c0_i32_0 = arith.constant 0 : i32
    %c0_i32_1 = arith.constant 0 : i32
    return %c0_i32, %c0_i32_0 : i32, i32
  }
  func.func @transform_3(%arg0: i32) -> (i32, i32) {
    %c0_i32 = arith.constant 0 : i32
    %c0_i32_0 = arith.constant 0 : i32
    %c0_i32_1 = arith.constant 0 : i32
    return %c0_i32, %c0_i32_0 : i32, i32
  }
  func.func @transform_4(%arg0: i32) -> (i32, i32) {
    %c0_i32 = arith.constant 0 : i32
    %c0_i32_0 = arith.constant 0 : i32
    %c0_i32_1 = arith.constant 0 : i32
    return %c0_i32, %c0_i32_0 : i32, i32
  }
  func.func @transform_5(%arg0: i32) -> (i32, i32) {
    %c0_i32 = arith.constant 0 : i32
    %c0_i32_0 = arith.constant 0 : i32
    return %arg0, %c0_i32 : i32, i32
  }
}

</mosaic_0001>

<bundles_post_ra>
// kernel: tpu_custom_call.1
= control target key start
LH: loop header
LB: loop body
LE: loop exit
PB: predicated region body
PF: predicated region fallthrough
CT: control target
= control target key end

     0   :  { %10 = vsyncpa [#allocation3], 0  ;;  %s1779_s0 = inlined_call_operand.hbm [shape: f32[16,128], index: 0, kind: input, shape index: {}]   ;;  %s1780_s1 = inlined_call_operand.hbm [shape: bf16[128,512], index: 1, kind: input, shape index: {}]   ;;  %s1781_s2 = inlined_call_operand.vmem [shape: f32[1,512], index: 2, kind: input, shape index: {}]   ;;  %s1782_s3 = inlined_call_operand.hbm [shape: bf16[512,128], index: 3, kind: input, shape index: {}]   ;;  %s1783_s4 = inlined_call_operand.vmem [shape: f32[1,128], index: 4, kind: input, shape index: {}]   ;;  %s1784_s5 = inlined_call_operand.hbm [shape: f32[16,128], index: 5, kind: output, shape index: {}]  }
   0x1   :  { %12 = vsyncpa [#allocation3 + $0x1], 0 }
   0x2   :  { %13 = vsyncpa [#allocation6], 0 }
   0x3   :  { %14 = vsyncpa [#allocation4], 0 }
   0x4   :  { %16 = vsyncpa [#allocation4 + $0x1], 0  ;;  %s1537_s18 = smov 0   ;;  %s1539_s19 = smov 0  }
   0x5   :  { %s1541_s20 = smov 0   ;;  %s1543_s21 = smov 0  }
   0x6 LB: > { %s1558_s22 = sadd.s32 4294967295, %s1496_s21   ;;  %s1055_s23 = sadd.s32 4294967294, %s1496_s21   ;;  %s1496_s21 = sphi %s1543_s21, %s1804_s21   ;;  %s1492_s20 = sphi %s1541_s20, %s1803_s20   ;;  %s1488_s19 = sphi %s1539_s19, %s1802_s19   ;;  %s1484_s18 = sphi %s1537_s18, %s1801_s18  }
   0x7   : > { %p42_p0 = scmp.ne.s32.totalorder %s1488_s19, %s1484_s18  ;;  %p1785_p1 = scmp.eq.s32.totalorder %s1558_s22, 0 }
   0x8   : > { %p156_p3 = scmp.eq.s32.totalorder %s1055_s23, 1  ;;  %p1056_p5 = scmp.ge.s32.totalorder %s1496_s21, 1 }
   0x9   : > { %p1567_p4 = por %p1785_p1, %p42_p0  ;;  %p163_p7 = scmp.lt.s32.totalorder %s1496_s21, 3 }
   0xa   : > { %p1572_p6 = por %p156_p3, %p42_p0  ;;  %s1498_s27 = smov [#allocation5]  }
   0xb   : > { %s1788_s24 = scalar_select %p1567_p4, 1, 0 }
   0xc   : > { %s1789_s25 = scalar_select %p1572_p6, 1, 0 }
   0xd   : > { %p1577_p8 = pnand %p1056_p5, %p163_p7  ;;  %s175_s28 = sshll.u32 %s1498_s27, 4  ;;  %s1581_s28 = int_to_ptr.vmem [resolvable:$true] %s175_s28 }
   0xe   : > { %s1499_s30 = smov [#allocation7]   ;;  %s1340_s9 = scalar_lea.hbm %s1780_s1, 4096 }
   0xf   : > { %p1192_p9 = pneg %p1577_p8  ;;  %s191_s6 = sshll.u32 %s1499_s30, 4  ;;  %s1592_s6 = int_to_ptr.vmem [resolvable:$true] %s191_s6 }
  0x10   : > { %p1341_p12 = scmp.ne.s32.totalorder %s1780_s1, %s1340_s9  ;;  %p1347_p5 = scmp.lt.u32.totalorder %s1340_s9, %s1780_s1 }
  0x11   : > { %p1588_p11 = pnand %p1192_p9, %p1785_p1 }
  0x13   : > { %p1342_p13 = pneg %p1588_p11 }
  0x15   : > { %p1343_p0 = pnand %p1342_p13, %p1341_p12 }
  0x17   : > { %p1344_p3 = pneg %p1343_p0 }
  0x19   : > { %p1349_p7 = pnand %p1347_p5, %p1344_p3 }
  0x1b   : > { %1352 = shalt.err (!%p1349_p7)
}
  0x1c   : > { %s1353_s14 = scalar_lea.vmem %s1581_s28, 4096  ;;  %p1361_p2 = scmp.lt.s32.totalorder %s1581_s28, %s1581_s28 }
  0x1d   : > { %p1354_p9 = scmp.ne.s32.totalorder %s1581_s28, %s1353_s14  ;;  %p1362_p12 = scmp.lt.s32.totalorder %s1353_s14, %s1353_s14 }
  0x1f   : > { %p1356_p10 = pnand %p1354_p9, %p1342_p13  ;;  %p1363_p0 = por %p1362_p12, %p1361_p2 }
  0x21   : > { %p1357_p1 = pneg %p1356_p10 }
  0x23   : > { %p1364_p6 = pnand %p1363_p0, %p1357_p1 }
  0x25   : > { %1367 = shalt.err (!%p1364_p6)
}
  0x26   : > { %s1500_s15 = smov 256   ;;  %s1501_s16 = smov 16  }
  0x27   : > { %1195 = dma.hbm_to_vmem [thread:$0]  (!%p1588_p11), %s1780_s1, 4096, %s1581_s28, [#allocation6], %s1500_s15, %s1500_s15, %s1501_s16  }
  0x28   : > { %s1368_s7 = scalar_lea.hbm %s1782_s3, 4096 }
  0x29   : > { %p1369_p2 = scmp.ne.s32.totalorder %s1782_s3, %s1368_s7  ;;  %p1375_p10 = scmp.lt.u32.totalorder %s1368_s7, %s1782_s3 }
  0x2b   : > { %p1371_p1 = pnand %p1369_p2, %p1342_p13 }
  0x2d   : > { %p1372_p6 = pneg %p1371_p1 }
  0x2f   : > { %p1377_p3 = pnand %p1375_p10, %p1372_p6 }
  0x31   : > { %1380 = shalt.err (!%p1377_p3)
}
  0x32   : > { %s1381_s28 = scalar_lea.vmem %s1592_s6, 4096  ;;  %p1389_p12 = scmp.lt.s32.totalorder %s1592_s6, %s1592_s6 }
  0x33   : > { %p1382_p5 = scmp.ne.s32.totalorder %s1592_s6, %s1381_s28  ;;  %p1390_p0 = scmp.lt.s32.totalorder %s1381_s28, %s1381_s28 }
  0x35   : > { %p1384_p7 = pnand %p1382_p5, %p1342_p13  ;;  %p1391_p2 = por %p1390_p0, %p1389_p12 }
  0x37   : > { %p1385_p9 = pneg %p1384_p7 }
  0x39   : > { %p1392_p1 = pnand %p1391_p2, %p1385_p9 }
  0x3b   : > { %1395 = shalt.err (!%p1392_p1)
}
  0x3c   : > { %s1502_s12 = smov 64   ;;  %s1503_s13 = smov 4  }
  0x3d   : > { %1198 = dma.hbm_to_vmem [thread:$0]  (!%p1588_p11), %s1782_s3, 4096, %s1592_s6, [#allocation6], %s1502_s12, %s1502_s12, %s1503_s13  }
  0x3e   : > { %s1647_s16 = sadd.s32 1, %s1496_s21   ;;  %s29_s23 = sadd.s32 1, %s1492_s20 }
  0x3f   : > { %s26_s17 = ssub.s32 %s1496_s21, %s1647_s16  ;;  %p36_p6 = scmp.ne.s32.totalorder %s1492_s20, %s1488_s19 }
  0x40   : > { %p27_p13 = scmp.eq.s32.totalorder %s26_s17, 0  ;;  %p37_p10 = scmp.eq.s32.totalorder %s1496_s21, 0 }
  0x41   : > { %p1792_p5 = scmp.eq.s32.totalorder %s1558_s22, 1  ;;  %p1209_p9 = scmp.lt.s32.totalorder %s1496_s21, 2 }
  0x42   : > { %s1656_s27 = scalar_select %p27_p13, %s1492_s20, %s29_s23  }
  0x43   : > { %p38_p3 = por %p37_p10, %p36_p6  ;;  %p1660_p7 = por %p1792_p5, %p36_p6 }
  0x44   : > { %s208_s29 = sand.u32 1, %s1492_s20   ;;  %s1061_s6 = sshll.u32 %s1496_s21, 7 }
  0x45   : > { %s1793_s30 = scalar_select %p1660_p7, 1, 0 }
  0x46   : > { %s1060_s7 = sshll.u32 %s208_s29, 3  ;;  %s1670_s10 = scalar_lea.hbm %s1779_s0, %s1061_s6 }
  0x47   : > { %s212_s11 = scalar_lea.vmem [#allocation2], %s1060_s7  ;;  %p1674_p11 = pnand %p1209_p9, %p38_p3 }
  0x48   : > { %s219_s28 = sshll.u32 %s212_s11, 4  ;;  %s209_s13 = scalar_lea.sflag [#allocation3], %s208_s29  ;;  %s1672_s28 = int_to_ptr.vmem [resolvable:$true] %s219_s28 }
  0x49   : > { %s1396_s14 = scalar_lea.hbm %s1670_s10, 128  ;;  %p1398_p0 = pneg %p1674_p11 }
  0x4a   : > { %p1397_p12 = scmp.ne.s32.totalorder %s1670_s10, %s1396_s14  ;;  %s1401_s23 = scalar_lea.hbm %s1779_s0, 256 }
  0x4b   : > { %p1402_p13 = scmp.lt.u32.totalorder %s1670_s10, %s1779_s0  ;;  %p1403_p6 = scmp.lt.u32.totalorder %s1401_s23, %s1396_s14 }
  0x4c   : > { %p1399_p2 = pnand %p1398_p0, %p1397_p12  ;;  %p1405_p3 = scmp.lt.u32.totalorder %s1396_s14, %s1670_s10 }
  0x4d   : > { %p1404_p10 = por %p1403_p6, %p1402_p13 }
  0x4e   : > { %p1400_p1 = pneg %p1399_p2 }
  0x4f   : > { %p1406_p5 = por %p1405_p3, %p1404_p10 }
  0x51   : > { %p1407_p9 = pnand %p1406_p5, %p1400_p1 }
  0x53   : > { %1410 = shalt.err (!%p1407_p9)
}
  0x54   : > { %s1411_s29 = scalar_lea.vmem %s1672_s28, 128  ;;  %s1504_s8 = smov [#allocation2]  }
  0x55   : > { %p1412_p12 = scmp.ne.s32.totalorder %s1672_s28, %s1411_s29  ;;  %s1416_s9 = sshll.u32 %s1504_s8, 4  ;;  %s1417_s9 = int_to_ptr.vmem [resolvable:$false] %s1416_s9 }
  0x56   : > { %s1418_s11 = scalar_lea.vmem %s1417_s9, 256  ;;  %p1419_p4 = scmp.lt.s32.totalorder %s1672_s28, %s1417_s9 }
  0x57   : > { %p1414_p2 = pnand %p1412_p12, %p1398_p0  ;;  %p1420_p13 = scmp.lt.s32.totalorder %s1418_s11, %s1411_s29 }
  0x59   : > { %p1415_p7 = pneg %p1414_p2  ;;  %p1421_p6 = por %p1420_p13, %p1419_p4 }
  0x5b   : > { %p1422_p10 = pnand %p1421_p6, %p1415_p7 }
  0x5d   : > { %1425 = shalt.err (!%p1422_p10)
}
  0x5e   : > { %1202 = dma.hbm_to_vmem [thread:$0]  (!%p1674_p11), %s1670_s10, 128, %s1672_s28, %s209_s13  }
  0x5f   : > { %228 = sbr.rel (%p1577_p8) target bundleno = 619 (0x26b), region = 40  ;;  %s1706_s14 = sand.u32 (!%p1577_p8), 1, %s1488_s19  }
  0x60   : > { %s1063_s15 = sshll.u32 (!%p1577_p8), %s1706_s14, 3  ;;  %s231_s17 = scalar_lea.sflag (!%p1577_p8), [#allocation3], %s1706_s14 }
  0x61   : > { %s1712_s23 = scalar_lea.vmem (!%p1577_p8), [#allocation2], %s1063_s15  ;;  %p1795_p4 = scmp.ne.s32.totalorder (!%p1577_p8), %s1788_s24, 0 }
  0x66   : > { %1471 = dma.done.wait (%p1795_p4), %s231_s17, 128  }
  0x67   : > { %1473 = vsyncadd (%p1795_p4), %s231_s17, 4294967168  ;;  %p1796_p7 = scmp.eq.s32.totalorder %s1558_s22, 0 }
  0x69   : > { %1475 = dma.done.wait (%p1796_p7), [#allocation6], 8192   ;;  %p1797_p8 = pmov %p1796_p7 }
  0x6a   : > { %v1505_v0 = vmov 0   ;;  %v1252_v1 = vld [vmem:[#allocation5 + $0x4] ss:$16 sps:$4 sm:$0xff]   ;;  %v1254_v2 = vld [vmem:[#allocation5 + $0xc] ss:$16 sps:$4 sm:$0xff]   ;;  %s1133_s12 = sshll.u32 %s1558_s22, 7 }
  0x6b   : > { %1477 = vsyncadd (%p1797_p8), [#allocation6], 4294959104  ;;  %518 = vmatprep.mubr.bf16.mxu0 %v1505_v0  ;;  %559 = vmatprep.mubr.bf16.mxu1 %v1505_v0  ;;  %v1256_v3 = vld [vmem:[#allocation5] ss:$16 sps:$4 sm:$0xff]   ;;  %v1257_v4 = vld [vmem:[#allocation5 + $0x8] ss:$16 sps:$4 sm:$0xff]   ;;  %s1735_s8 = scalar_lea.hbm %s1784_s5, %s1133_s12 }
  0x6c   : > { %486 = vmatprep.subr.bf16.mxu0 %v1252_v1  ;;  %527 = vmatprep.subr.bf16.mxu1 %v1254_v2  ;;  %v1258_v5 = vld [vmem:[#allocation5 + $0x24] ss:$16 sps:$4 sm:$0xff]   ;;  %v1260_v6 = vld [vmem:[#allocation5 + $0x2c] ss:$16 sps:$4 sm:$0xff]   ;;  %v1262_v7 = vld [vmem:[#allocation5 + $0x20] ss:$16 sps:$4 sm:$0xff]  }
  0x6d   : > { %487 = vmatpush1.bf16.msra.mxu0 %v1256_v3  ;;  %528 = vmatpush1.bf16.msra.mxu1 %v1257_v4  ;;  %v1263_v8 = vld [vmem:[#allocation5 + $0x28] ss:$16 sps:$4 sm:$0xff]   ;;  %v1264_v9 = vld [vmem:[#allocation5 + $0x44] ss:$16 sps:$4 sm:$0xff]   ;;  %v1266_v10 = vld [vmem:[#allocation5 + $0x4c] ss:$16 sps:$4 sm:$0xff]   ;;  %v306_v3 = vlaneseq }
  0x6e   : > { %488 = vmatprep.subr.bf16.mxu0 %v1258_v5  ;;  %529 = vmatprep.subr.bf16.mxu1 %v1260_v6  ;;  %v1268_v11 = vld [vmem:[#allocation5 + $0x40] ss:$16 sps:$4 sm:$0xff]   ;;  %v1269_v12 = vld [vmem:[#allocation5 + $0x48] ss:$16 sps:$4 sm:$0xff]   ;;  %v1270_v13 = vld [vmem:[#allocation5 + $0x64] ss:$16 sps:$4 sm:$0xff]  }
  0x6f   : > { %v1272_v14 = vld [vmem:[#allocation5 + $0x6c] ss:$16 sps:$4 sm:$0xff]   ;;  %v1274_v15 = vld [vmem:[#allocation5 + $0x60] ss:$16 sps:$4 sm:$0xff]   ;;  %v1275_v16 = vld [vmem:[#allocation5 + $0x68] ss:$16 sps:$4 sm:$0xff]  }
  0x70   : > { %v1276_v17 = vld [vmem:[#allocation5 + $0x84] ss:$16 sps:$4 sm:$0xff]   ;;  %v1278_v18 = vld [vmem:[#allocation5 + $0x8c] ss:$16 sps:$4 sm:$0xff]   ;;  %v1280_v19 = vld [vmem:[#allocation5 + $0x80] ss:$16 sps:$4 sm:$0xff]  }
  0x71   : > { %489 = vmatpush1.bf16.msra.mxu0 %v1262_v7  ;;  %530 = vmatpush1.bf16.msra.mxu1 %v1263_v8  ;;  %v1281_v20 = vld [vmem:[#allocation5 + $0x88] ss:$16 sps:$4 sm:$0xff]   ;;  %v1282_v21 = vld [vmem:[#allocation5 + $0xa4] ss:$16 sps:$4 sm:$0xff]   ;;  %v1284_v22 = vld [vmem:[#allocation5 + $0xac] ss:$16 sps:$4 sm:$0xff]  }
  0x72   : > { %490 = vmatprep.subr.bf16.mxu0 %v1264_v9  ;;  %531 = vmatprep.subr.bf16.mxu1 %v1266_v10  ;;  %v1286_v23 = vld [vmem:[#allocation5 + $0xa0] ss:$16 sps:$4 sm:$0xff]   ;;  %v1287_v24 = vld [vmem:[#allocation5 + $0xa8] ss:$16 sps:$4 sm:$0xff]   ;;  %v1288_v25 = vld [vmem:[#allocation5 + $0xc4] ss:$16 sps:$4 sm:$0xff]  }
  0x73   : > { %v1290_v26 = vld [vmem:[#allocation5 + $0xcc] ss:$16 sps:$4 sm:$0xff]   ;;  %v1292_v27 = vld [vmem:[#allocation5 + $0xc0] ss:$16 sps:$4 sm:$0xff]   ;;  %v1293_v28 = vld [vmem:[#allocation5 + $0xc8] ss:$16 sps:$4 sm:$0xff]  }
  0x74   : > { %v1294_v29 = vld [vmem:[#allocation5 + $0xe4] ss:$16 sps:$4 sm:$0xff]   ;;  %v1296_v30 = vld [vmem:[#allocation5 + $0xec] ss:$16 sps:$4 sm:$0xff]   ;;  %v1298_v31 = vld [vmem:[#allocation5 + $0xe0] ss:$16 sps:$4 sm:$0xff]  }
  0x75   : > { %491 = vmatpush1.bf16.msra.mxu0 %v1268_v11  ;;  %532 = vmatpush1.bf16.msra.mxu1 %v1269_v12  ;;  %v1299_v32 = vld [vmem:[#allocation5 + $0xe8] ss:$16 sps:$4 sm:$0xff]   ;;  %v1300_v35 = vld [vmem:[#allocation7 + $0x40] sm:$0xff]   ;;  %v1308_v43 = vld [vmem:[#allocation7 + $0x50] sm:$0xff]   ;;  %v307_v4 = vshrl.u32 %v306_v3, 7  ;;  %s268_s13 = scalar_lea.vmem [#allocation8], %s1063_s15 }
  0x76   : > { %492 = vmatprep.subr.bf16.mxu0 %v1270_v13  ;;  %533 = vmatprep.subr.bf16.mxu1 %v1272_v14  ;;  %v270_v33 = vld [vmem:[%s1712_s23] sm:$0xff]  ;;  %v1301_v36 = vld [vmem:[#allocation7 + $0xc0] sm:$0xff]   ;;  %v1304_v39 = vld [vmem:[#allocation7 + $0x48] sm:$0xff]   ;;  %s966_s7 = sshll.u32 %s268_s13, 4  ;;  %s953_s9 = scalar_lea.sflag [#allocation4], %s1706_s14  ;;  %s1737_s7 = int_to_ptr.vmem [resolvable:$true] %s966_s7 }
  0x77   : > { %v271_v34 = vpack.c.bf16 %v270_v33, %v270_v33  ;;  %v1302_v37 = vld [vmem:[#allocation7] sm:$0xff]   ;;  %v1305_v40 = vld [vmem:[#allocation7 + $0xc8] sm:$0xff]   ;;  %v1309_v44 = vld [vmem:[#allocation7 + $0xd0] sm:$0xff]   ;;  %v308_v5 = vsub.s32 0, %v307_v4  ;;  %v316_v6 = vsub.s32 2, %v307_v4  ;;  %v312_v8 = vsub.s32 1, %v307_v4 }
  0x78   : > { %v1303_v38 = vld [vmem:[#allocation7 + $0x80] sm:$0xff]   ;;  %v1306_v41 = vld [vmem:[#allocation7 + $0x8] sm:$0xff]   ;;  %v1310_v45 = vld [vmem:[#allocation7 + $0x10] sm:$0xff]   ;;  %v320_v9 = vsub.s32 3, %v307_v4  ;;  %s1426_s11 = scalar_lea.vmem %s1737_s7, 128  ;;  %p1798_p0 = scmp.ne.s32.totalorder %s1793_s30, 0 }
  0x79   : > { %493 = vmatpush1.bf16.msra.mxu0 %v1274_v15  ;;  %534 = vmatpush1.bf16.msra.mxu1 %v1275_v16  ;;  %v1307_v42 = vld [vmem:[#allocation7 + $0x88] sm:$0xff]   ;;  %v1311_v46 = vld [vmem:[#allocation7 + $0x90] sm:$0xff]   ;;  %v1312_v47 = vld [vmem:[#allocation7 + $0x58] sm:$0xff]   ;;  %p1427_p11 = scmp.ne.s32.totalorder %s1737_s7, %s1426_s11  ;;  %s1506_s22 = smov [#allocation8]  }
  0x7a   : > { %494 = vmatprep.subr.bf16.mxu0 %v1276_v17  ;;  %535 = vmatprep.subr.bf16.mxu1 %v1278_v18  ;;  %v1313_v48 = vld [vmem:[#allocation7 + $0xd8] sm:$0xff]   ;;  %v1316_v51 = vld [vmem:[#allocation7 + $0x60] sm:$0xff]   ;;  %v1320_v55 = vld [vmem:[#allocation7 + $0x68] sm:$0xff]   ;;  %s1430_s15 = sshll.u32 %s1506_s22, 4  ;;  %s1431_s15 = int_to_ptr.vmem [resolvable:$false] %s1430_s15 }
  0x7b   : > { %v1314_v49 = vld [vmem:[#allocation7 + $0x18] sm:$0xff]   ;;  %v1317_v52 = vld [vmem:[#allocation7 + $0xe0] sm:$0xff]   ;;  %v1321_v56 = vld [vmem:[#allocation7 + $0xe8] sm:$0xff]   ;;  %p1428_p1 = pnand %p1427_p11, %p1798_p0  ;;  %s1432_s17 = scalar_lea.vmem %s1431_s15, 256 }
  0x7c   : > { %v1315_v50 = vld [vmem:[#allocation7 + $0x98] sm:$0xff]   ;;  %v1318_v53 = vld [vmem:[#allocation7 + $0x20] sm:$0xff]   ;;  %v1322_v57 = vld [vmem:[#allocation7 + $0x28] sm:$0xff]   ;;  %p1433_p5 = scmp.lt.s32.totalorder %s1737_s7, %s1431_s15  ;;  %p1434_p9 = scmp.lt.s32.totalorder %s1432_s17, %s1426_s11 }
  0x7d   : > { %495 = vmatpush1.bf16.msra.mxu0 %v1280_v19  ;;  %536 = vmatpush1.bf16.msra.mxu1 %v1281_v20  ;;  %v1319_v54 = vld [vmem:[#allocation7 + $0xa0] sm:$0xff]   ;;  %v1323_v58 = vld [vmem:[#allocation7 + $0xa8] sm:$0xff]   ;;  %v1324_v59 = vld [vmem:[#allocation7 + $0x70] sm:$0xff]   ;;  %p1429_p3 = pneg %p1428_p1 }
  0x7e   : > { %496 = vmatprep.subr.bf16.mxu0 %v1282_v21  ;;  %537 = vmatprep.subr.bf16.mxu1 %v1284_v22  ;;  %v1325_v60 = vld [vmem:[#allocation7 + $0xf0] sm:$0xff]   ;;  %v1328_v63 = vld [vmem:[#allocation7 + $0x78] sm:$0xff]   ;;  %p1435_p12 = por %p1434_p9, %p1433_p5 }
  0x7f   : > { %v1326_v61 = vld [vmem:[#allocation7 + $0x30] sm:$0xff]   ;;  %v1329_v0 = vld [vmem:[#allocation7 + $0xf8] sm:$0xff]  }
  0x80   : > { %v1327_v62 = vld [vmem:[#allocation7 + $0xb0] sm:$0xff]   ;;  %v1330_v1 = vld [vmem:[#allocation7 + $0x38] sm:$0xff]   ;;  %p1436_p2 = pnand %p1435_p12, %p1429_p3 }
  0x81   : > { %497 = vmatpush1.bf16.msra.mxu0 %v1286_v23  ;;  %538 = vmatpush1.bf16.msra.mxu1 %v1287_v24  ;;  %v1331_v2 = vld [vmem:[#allocation7 + $0xb8] sm:$0xff]   ;;  %v304_v7 = vld [vmem:[%s1781_s2] sm:$0xf] }
  0x82   : > { %498 = vmatprep.subr.bf16.mxu0 %v1288_v25  ;;  %539 = vmatprep.subr.bf16.mxu1 %v1290_v26  ;;  %v309_v10 = vrot.slane %v304_v7, %v308_v5  ;;  %v317_v11 = vrot.slane %v304_v7, %v316_v6  ;;  %v313_v12 = vrot.slane %v304_v7, %v312_v8  ;;  %v1099_v4 = vld [vmem:[%s1783_s4] ss:$0 sm:$0xff] }
  0x83   : > { %v321_v13 = vrot.slane %v304_v7, %v320_v9 }
  0x85   : > { %499 = vmatpush1.bf16.msra.mxu0 %v1292_v27  ;;  %540 = vmatpush1.bf16.msra.mxu1 %v1293_v28 }
  0x86   : > { %500 = vmatprep.subr.bf16.mxu0 %v1294_v29  ;;  %541 = vmatprep.subr.bf16.mxu1 %v1296_v30 }
  0x89   : > { %501 = vmatpush1.bf16.msra.mxu0 %v1298_v31  ;;  %542 = vmatpush1.bf16.msra.mxu1 %v1299_v32 }
  0x8a   : > { %1136 = vmatprep.subr.bf16.mxu0 %v1300_v35  ;;  %1158 = vmatprep.subr.bf16.mxu1 %v1301_v36 }
  0x8c   : > { %519 = vmatmul.mubr.bf16.vlgmr.msra.gmra.mrb[0].mxu0 %v271_v34  ;;  %560 = vmatmul.mubr.bf16.vlgmr.msra.gmra.mrb[0].mxu1 %v271_v34 }
  0x8d   : > { %1137 = vmatpush3.bf16.msra.mxu0 %v1302_v37  ;;  %1159 = vmatpush3.bf16.msra.mxu1 %v1303_v38 }
  0x8e   : > { %1138 = vmatprep.subr.bf16.mxu0 %v1304_v39  ;;  %1160 = vmatprep.subr.bf16.mxu1 %v1305_v40 }
  0x91   : > { %1139 = vmatpush3.bf16.msra.mxu0 %v1306_v41  ;;  %1161 = vmatpush3.bf16.msra.mxu1 %v1307_v42 }
  0x92   : > { %1140 = vmatprep.subr.bf16.mxu0 %v1308_v43  ;;  %1162 = vmatprep.subr.bf16.mxu1 %v1309_v44 }
  0x95   : > { %1141 = vmatpush3.bf16.msra.mxu0 %v1310_v45  ;;  %1163 = vmatpush3.bf16.msra.mxu1 %v1311_v46 }
  0x96   : > { %1142 = vmatprep.subr.bf16.mxu0 %v1312_v47  ;;  %1164 = vmatprep.subr.bf16.mxu1 %v1313_v48 }
  0x99   : > { %1143 = vmatpush3.bf16.msra.mxu0 %v1314_v49  ;;  %1165 = vmatpush3.bf16.msra.mxu1 %v1315_v50 }
  0x9a   : > { %1144 = vmatprep.subr.bf16.mxu0 %v1316_v51  ;;  %1166 = vmatprep.subr.bf16.mxu1 %v1317_v52 }
  0x9d   : > { %1145 = vmatpush3.bf16.msra.mxu0 %v1318_v53  ;;  %1167 = vmatpush3.bf16.msra.mxu1 %v1319_v54 }
  0x9e   : > { %1146 = vmatprep.subr.bf16.mxu0 %v1320_v55  ;;  %1168 = vmatprep.subr.bf16.mxu1 %v1321_v56 }
  0xa1   : > { %1147 = vmatpush3.bf16.msra.mxu0 %v1322_v57  ;;  %1169 = vmatpush3.bf16.msra.mxu1 %v1323_v58 }
  0xa2   : > { %1148 = vmatprep.subr.bf16.mxu0 %v1324_v59  ;;  %1170 = vmatprep.subr.bf16.mxu1 %v1325_v60 }
  0xa5   : > { %1149 = vmatpush3.bf16.msra.mxu0 %v1326_v61  ;;  %1171 = vmatpush3.bf16.msra.mxu1 %v1327_v62 }
  0xa6   : > { %1150 = vmatprep.subr.bf16.mxu0 %v1328_v63  ;;  %1172 = vmatprep.subr.bf16.mxu1 %v1329_v0 }
  0xa9   : > { %1151 = vmatpush3.bf16.msra.mxu0 %v1330_v1  ;;  %1173 = vmatpush3.bf16.msra.mxu1 %v1331_v2 }
 0x15f   : > { %v520_v14 = vpop.f32.mrb[0].mxu0  ;;  %v561_v15 = vpop.f32.mrb[0].mxu1 }
 0x160   : > { %v521_v16 = vadd.f32 %v520_v14, %v309_v10  ;;  %v562_v17 = vadd.f32 %v561_v15, %v317_v11  ;;  %v522_v18 = vpop.f32.mrb[1].mxu0  ;;  %v563_v19 = vpop.f32.mrb[1].mxu1 }
 0x161   : > { %v523_v20 = vadd.f32 %v522_v18, %v313_v12  ;;  %v564_v21 = vadd.f32 %v563_v19, %v321_v13  ;;  %v524_v22 = vpop.f32.mrb[2].mxu0  ;;  %v565_v23 = vpop.f32.mrb[2].mxu1 }
 0x162   : > { %v568_v24 = vmul.f32 %v521_v16, %v521_v16  ;;  %v570_v25 = vmul.f32 %v562_v17, %v562_v17  ;;  %v525_v26 = vpop.f32.mrb[3].mxu0  ;;  %v566_v27 = vpop.f32.mrb[3].mxu1 }
 0x163   : > { %v569_v28 = vmul.f32 %v523_v20, %v523_v20  ;;  %v571_v29 = vmul.f32 %v564_v21, %v564_v21 }
 0x164   : > { %v572_v30 = vmul.f32 %v568_v24, %v521_v16  ;;  %v574_v31 = vmul.f32 %v570_v25, %v562_v17 }
 0x165   : > { %v573_v32 = vmul.f32 %v569_v28, %v523_v20  ;;  %v575_v33 = vmul.f32 %v571_v29, %v564_v21 }
 0x166   : > { %v576_v34 = vmul.f32 0.044715, %v572_v30  ;;  %v578_v35 = vmul.f32 0.044715, %v574_v31 }
 0x167   : > { %v577_v36 = vmul.f32 0.044715, %v573_v32  ;;  %v579_v37 = vmul.f32 0.044715, %v575_v33 }
 0x168   : > { %v580_v38 = vadd.f32 %v576_v34, %v521_v16  ;;  %v582_v39 = vadd.f32 %v578_v35, %v562_v17 }
 0x169   : > { %v581_v40 = vadd.f32 %v577_v36, %v523_v20  ;;  %v583_v41 = vadd.f32 %v579_v37, %v564_v21 }
 0x16a   : > { %v584_v42 = vmul.f32 0.7978846, %v580_v38  ;;  %v586_v43 = vmul.f32 0.7978846, %v582_v39 }
 0x16b   : > { %v585_v44 = vmul.f32 0.7978846, %v581_v40  ;;  %v587_v45 = vmul.f32 0.7978846, %v583_v41 }
 0x16c   : > { %1332 = vtanh.f32 %v584_v42 }
 0x16d   : > { %1334 = vtanh.f32 %v586_v43 }
 0x16e   : > { %1336 = vtanh.f32 %v585_v44 }
 0x16f   : > { %1338 = vtanh.f32 %v587_v45 }
 0x176   : > { %v1333_v46 = vpop.eup %1332 }
 0x177   : > { %v1335_v47 = vpop.eup %1334  ;;  %v592_v48 = vadd.f32 1.0, %v1333_v46 }
 0x178   : > { %v1337_v49 = vpop.eup %1336  ;;  %v594_v50 = vadd.f32 1.0, %v1335_v47 }
 0x179   : > { %v1339_v51 = vpop.eup %1338  ;;  %v593_v52 = vadd.f32 1.0, %v1337_v49  ;;  %v596_v53 = vmul.f32 0.5, %v592_v48 }
 0x17a   : > { %v595_v54 = vadd.f32 1.0, %v1339_v51  ;;  %v598_v55 = vmul.f32 0.5, %v594_v50 }
 0x17b   : > { %v597_v56 = vmul.f32 0.5, %v593_v52  ;;  %v600_v58 = vmul.f32 %v596_v53, %v521_v16 }
 0x17c   : > { %v599_v57 = vmul.f32 0.5, %v595_v54  ;;  %v602_v60 = vmul.f32 %v598_v55, %v562_v17 }
 0x17d   : > { %v601_v59 = vmul.f32 %v597_v56, %v523_v20  ;;  %v604_v0 = vpack.c.bf16 %v600_v58, %v600_v58 }
 0x17e   : > { %v603_v61 = vmul.f32 %v599_v57, %v564_v21  ;;  %v606_v1 = vpack.c.bf16 %v602_v60, %v602_v60 }
 0x17f   : > { %v605_v62 = vpack.c.bf16 %v601_v59, %v601_v59 }
 0x180   : > { %v607_v63 = vpack.c.bf16 %v603_v61, %v603_v61 }
 0x181   : > { %903 = vmatprep.mubr.bf16.mxu0 %v605_v62 }
 0x182   : > { %943 = vmatprep.mubr.bf16.mxu1 %v607_v63  ;;  %904 = vmatmul.mubr.bf16.vlgmr.msra.gmra.mrb[4].mxu0 %v604_v0 }
 0x183   : > { %944 = vmatmul.mubr.bf16.vlgmr.msra.gmra.mrb[4].mxu1 %v606_v1 }
 0x255   : > { %v1152_v2 = vpop.f32.mrb[4].mxu0 }
 0x256   : > { %v1174_v3 = vpop.f32.mrb[4].mxu1  ;;  %v1153_v5 = vpop.f32.mrb[5].mxu0 }
 0x257   : > { %v1154_v6 = vadd.f32 %v1153_v5, %v1152_v2  ;;  %v1175_v7 = vpop.f32.mrb[5].mxu1  ;;  %v1155_v8 = vpop.f32.mrb[6].mxu0 }
 0x258   : > { %v1176_v9 = vadd.f32 %v1175_v7, %v1174_v3  ;;  %v1177_v10 = vpop.f32.mrb[6].mxu1  ;;  %v1156_v11 = vpop.f32.mrb[7].mxu0 }
 0x259   : > { %v906_v12 = vadd.f32 %v1154_v6, %v1099_v4  ;;  %v1178_v13 = vpop.f32.mrb[7].mxu1 }
 0x25b   : > { %v946_v14 = vadd.f32 %v1176_v9, %v906_v12 }
 0x25d   : > { %951 = vst [vmem:[%s268_s13] sm:$0xff] %v946_v14 }
 0x25e   : > { %1439 = shalt.err (!%p1436_p2)
}
 0x25f   : > { %s1440_s14 = scalar_lea.hbm %s1735_s8, 128  ;;  %s1444_s26 = scalar_lea.hbm %s1784_s5, 256 }
 0x260   : > { %p1441_p13 = scmp.ne.s32.totalorder %s1735_s8, %s1440_s14  ;;  %p1445_p4 = scmp.lt.u32.totalorder %s1735_s8, %s1784_s5 }
 0x261   : > { %p1446_p7 = scmp.lt.u32.totalorder %s1444_s26, %s1440_s14  ;;  %p1448_p11 = scmp.lt.u32.totalorder %s1440_s14, %s1735_s8 }
 0x262   : > { %p1442_p6 = pnand %p1441_p13, %p1798_p0 }
 0x263   : > { %p1447_p8 = por %p1446_p7, %p1445_p4 }
 0x264   : > { %p1443_p10 = pneg %p1442_p6 }
 0x265   : > { %p1449_p1 = por %p1448_p11, %p1447_p8 }
 0x267   : > { %p1450_p3 = pnand %p1449_p1, %p1443_p10 }
 0x269   : > { %1453 = shalt.err (!%p1450_p3)
}
 0x26a   : > { %1190 = dma.vmem_to_hbm [thread:$0]  (%p1798_p0), %s1737_s7, 128, %s1735_s8, %s953_s9  }
 0x26b PF: > { %s978_s12 = sand.u32 1, %s1484_s18   ;;  %p1799_p5 = scmp.ne.s32.totalorder %s1789_s25, 0 }
 0x26c   : > { %p1800_p9 = scmp.ge.s32.totalorder %s1496_s21, 2  ;;  %s979_s13 = scalar_lea.sflag [#allocation4], %s978_s12 }
 0x26e   : > { %p1204_p12 = pnand %p1800_p9, %p1799_p5 }
 0x270   : > { %1479 = dma.done.wait (!%p1204_p12), %s979_s13, 128  }
 0x271   : > { %1481 = vsyncadd (!%p1204_p12), %s979_s13, 4294967168  ;;  %p19_p2 = scmp.ge.s32.totalorder %s1647_s16, 4   ;;  %s1801_s18 = smov %s1488_s19 }
 0x272   : > { %s1802_s19 = smov %s1492_s20  ;;  %s1803_s20 = smov %s1656_s27 }
 0x273   : > { %s1804_s21 = smov %s1647_s16  ;;  %21 = sbr.rel (!%p19_p2) target bundleno = 6 (0x6), region = 93 }
 0x27a   :  { %984 = vsyncpa [#allocation3], 1 }
 0x27b   :  { %986 = vsyncpa [#allocation3 + $0x1], 1 }
 0x27c   :  { %987 = vsyncpa [#allocation6], 1 }
 0x27d   :  { %988 = vsyncpa [#allocation4], 1 }
 0x27e   :  { %990 = vsyncpa [#allocation4 + $0x1], 1 }

// kernel: tpu_custom_call.1
= control target key start
LH: loop header
LB: loop body
LE: loop exit
PB: predicated region body
PF: predicated region fallthrough
CT: control target
= control target key end

     0   :  { %10 = vsyncpa [#allocation3], 0  ;;  %s1779_s0 = inlined_call_operand.hbm [shape: f32[16,128], index: 0, kind: input, shape index: {}]   ;;  %s1780_s1 = inlined_call_operand.hbm [shape: bf16[128,512], index: 1, kind: input, shape index: {}]   ;;  %s1781_s2 = inlined_call_operand.vmem [shape: f32[1,512], index: 2, kind: input, shape index: {}]   ;;  %s1782_s3 = inlined_call_operand.hbm [shape: bf16[512,128], index: 3, kind: input, shape index: {}]   ;;  %s1783_s4 = inlined_call_operand.vmem [shape: f32[1,128], index: 4, kind: input, shape index: {}]   ;;  %s1784_s5 = inlined_call_operand.hbm [shape: f32[16,128], index: 5, kind: output, shape index: {}]  }
   0x1   :  { %12 = vsyncpa [#allocation3 + $0x1], 0 }
   0x2   :  { %13 = vsyncpa [#allocation6], 0 }
   0x3   :  { %14 = vsyncpa [#allocation4], 0 }
   0x4   :  { %16 = vsyncpa [#allocation4 + $0x1], 0  ;;  %s1537_s18 = smov 0   ;;  %s1539_s19 = smov 0  }
   0x5   :  { %s1541_s20 = smov 0   ;;  %s1543_s21 = smov 0  }
   0x6 LB: > { %s1558_s22 = sadd.s32 4294967295, %s1496_s21   ;;  %s1055_s23 = sadd.s32 4294967294, %s1496_s21   ;;  %s1496_s21 = sphi %s1543_s21, %s1804_s21   ;;  %s1492_s20 = sphi %s1541_s20, %s1803_s20   ;;  %s1488_s19 = sphi %s1539_s19, %s1802_s19   ;;  %s1484_s18 = sphi %s1537_s18, %s1801_s18  }
   0x7   : > { %p42_p0 = scmp.ne.s32.totalorder %s1488_s19, %s1484_s18  ;;  %p1785_p1 = scmp.eq.s32.totalorder %s1558_s22, 0 }
   0x8   : > { %p156_p3 = scmp.eq.s32.totalorder %s1055_s23, 1  ;;  %p1056_p5 = scmp.ge.s32.totalorder %s1496_s21, 1 }
   0x9   : > { %p1567_p4 = por %p1785_p1, %p42_p0  ;;  %p163_p7 = scmp.lt.s32.totalorder %s1496_s21, 3 }
   0xa   : > { %p1572_p6 = por %p156_p3, %p42_p0  ;;  %s1498_s27 = smov [#allocation5]  }
   0xb   : > { %s1788_s24 = scalar_select %p1567_p4, 1, 0 }
   0xc   : > { %s1789_s25 = scalar_select %p1572_p6, 1, 0 }
   0xd   : > { %p1577_p8 = pnand %p1056_p5, %p163_p7  ;;  %s175_s28 = sshll.u32 %s1498_s27, 4  ;;  %s1581_s28 = int_to_ptr.vmem [resolvable:$true] %s175_s28 }
   0xe   : > { %s1499_s30 = smov [#allocation7]   ;;  %s1340_s9 = scalar_lea.hbm %s1780_s1, 4096 }
   0xf   : > { %p1192_p9 = pneg %p1577_p8  ;;  %s191_s6 = sshll.u32 %s1499_s30, 4  ;;  %s1592_s6 = int_to_ptr.vmem [resolvable:$true] %s191_s6 }
  0x10   : > { %p1341_p12 = scmp.ne.s32.totalorder %s1780_s1, %s1340_s9  ;;  %p1347_p5 = scmp.lt.u32.totalorder %s1340_s9, %s1780_s1 }
  0x11   : > { %p1588_p11 = pnand %p1192_p9, %p1785_p1 }
  0x13   : > { %p1342_p13 = pneg %p1588_p11 }
  0x15   : > { %p1343_p0 = pnand %p1342_p13, %p1341_p12 }
  0x17   : > { %p1344_p3 = pneg %p1343_p0 }
  0x19   : > { %p1349_p7 = pnand %p1347_p5, %p1344_p3 }
  0x1b   : > { %1352 = shalt.err (!%p1349_p7)
}
  0x1c   : > { %s1353_s14 = scalar_lea.vmem %s1581_s28, 4096  ;;  %p1361_p2 = scmp.lt.s32.totalorder %s1581_s28, %s1581_s28 }
  0x1d   : > { %p1354_p9 = scmp.ne.s32.totalorder %s1581_s28, %s1353_s14  ;;  %p1362_p12 = scmp.lt.s32.totalorder %s1353_s14, %s1353_s14 }
  0x1f   : > { %p1356_p10 = pnand %p1354_p9, %p1342_p13  ;;  %p1363_p0 = por %p1362_p12, %p1361_p2 }
  0x21   : > { %p1357_p1 = pneg %p1356_p10 }
  0x23   : > { %p1364_p6 = pnand %p1363_p0, %p1357_p1 }
  0x25   : > { %1367 = shalt.err (!%p1364_p6)
}
  0x26   : > { %s1500_s15 = smov 256   ;;  %s1501_s16 = smov 16  }
  0x27   : > { %1195 = dma.hbm_to_vmem [thread:$0]  (!%p1588_p11), %s1780_s1, 4096, %s1581_s28, [#allocation6], %s1500_s15, %s1500_s15, %s1501_s16  }
  0x28   : > { %s1368_s7 = scalar_lea.hbm %s1782_s3, 4096 }
  0x29   : > { %p1369_p2 = scmp.ne.s32.totalorder %s1782_s3, %s1368_s7  ;;  %p1375_p10 = scmp.lt.u32.totalorder %s1368_s7, %s1782_s3 }
  0x2b   : > { %p1371_p1 = pnand %p1369_p2, %p1342_p13 }
  0x2d   : > { %p1372_p6 = pneg %p1371_p1 }
  0x2f   : > { %p1377_p3 = pnand %p1375_p10, %p1372_p6 }
  0x31   : > { %1380 = shalt.err (!%p1377_p3)
}
  0x32   : > { %s1381_s28 = scalar_lea.vmem %s1592_s6, 4096  ;;  %p1389_p12 = scmp.lt.s32.totalorder %s1592_s6, %s1592_s6 }
  0x33   : > { %p1382_p5 = scmp.ne.s32.totalorder %s1592_s6, %s1381_s28  ;;  %p1390_p0 = scmp.lt.s32.totalorder %s1381_s28, %s1381_s28 }
  0x35   : > { %p1384_p7 = pnand %p1382_p5, %p1342_p13  ;;  %p1391_p2 = por %p1390_p0, %p1389_p12 }
  0x37   : > { %p1385_p9 = pneg %p1384_p7 }
  0x39   : > { %p1392_p1 = pnand %p1391_p2, %p1385_p9 }
  0x3b   : > { %1395 = shalt.err (!%p1392_p1)
}
  0x3c   : > { %s1502_s12 = smov 64   ;;  %s1503_s13 = smov 4  }
  0x3d   : > { %1198 = dma.hbm_to_vmem [thread:$0]  (!%p1588_p11), %s1782_s3, 4096, %s1592_s6, [#allocation6], %s1502_s12, %s1502_s12, %s1503_s13  }
  0x3e   : > { %s1647_s16 = sadd.s32 1, %s1496_s21   ;;  %s29_s23 = sadd.s32 1, %s1492_s20 }
  0x3f   : > { %s26_s17 = ssub.s32 %s1496_s21, %s1647_s16  ;;  %p36_p6 = scmp.ne.s32.totalorder %s1492_s20, %s1488_s19 }
  0x40   : > { %p27_p13 = scmp.eq.s32.totalorder %s26_s17, 0  ;;  %p37_p10 = scmp.eq.s32.totalorder %s1496_s21, 0 }
  0x41   : > { %p1792_p5 = scmp.eq.s32.totalorder %s1558_s22, 1  ;;  %p1209_p9 = scmp.lt.s32.totalorder %s1496_s21, 2 }
  0x42   : > { %s1656_s27 = scalar_select %p27_p13, %s1492_s20, %s29_s23  }
  0x43   : > { %p38_p3 = por %p37_p10, %p36_p6  ;;  %p1660_p7 = por %p1792_p5, %p36_p6 }
  0x44   : > { %s208_s29 = sand.u32 1, %s1492_s20   ;;  %s1061_s6 = sshll.u32 %s1496_s21, 7 }
  0x45   : > { %s1793_s30 = scalar_select %p1660_p7, 1, 0 }
  0x46   : > { %s1060_s7 = sshll.u32 %s208_s29, 3  ;;  %s1670_s10 = scalar_lea.hbm %s1779_s0, %s1061_s6 }
  0x47   : > { %s212_s11 = scalar_lea.vmem [#allocation2], %s1060_s7  ;;  %p1674_p11 = pnand %p1209_p9, %p38_p3 }
  0x48   : > { %s219_s28 = sshll.u32 %s212_s11, 4  ;;  %s209_s13 = scalar_lea.sflag [#allocation3], %s208_s29  ;;  %s1672_s28 = int_to_ptr.vmem [resolvable:$true] %s219_s28 }
  0x49   : > { %s1396_s14 = scalar_lea.hbm %s1670_s10, 128  ;;  %p1398_p0 = pneg %p1674_p11 }
  0x4a   : > { %p1397_p12 = scmp.ne.s32.totalorder %s1670_s10, %s1396_s14  ;;  %s1401_s23 = scalar_lea.hbm %s1779_s0, 256 }
  0x4b   : > { %p1402_p13 = scmp.lt.u32.totalorder %s1670_s10, %s1779_s0  ;;  %p1403_p6 = scmp.lt.u32.totalorder %s1401_s23, %s1396_s14 }
  0x4c   : > { %p1399_p2 = pnand %p1398_p0, %p1397_p12  ;;  %p1405_p3 = scmp.lt.u32.totalorder %s1396_s14, %s1670_s10 }
  0x4d   : > { %p1404_p10 = por %p1403_p6, %p1402_p13 }
  0x4e   : > { %p1400_p1 = pneg %p1399_p2 }
  0x4f   : > { %p1406_p5 = por %p1405_p3, %p1404_p10 }
  0x51   : > { %p1407_p9 = pnand %p1406_p5, %p1400_p1 }
  0x53   : > { %1410 = shalt.err (!%p1407_p9)
}
  0x54   : > { %s1411_s29 = scalar_lea.vmem %s1672_s28, 128  ;;  %s1504_s8 = smov [#allocation2]  }
  0x55   : > { %p1412_p12 = scmp.ne.s32.totalorder %s1672_s28, %s1411_s29  ;;  %s1416_s9 = sshll.u32 %s1504_s8, 4  ;;  %s1417_s9 = int_to_ptr.vmem [resolvable:$false] %s1416_s9 }
  0x56   : > { %s1418_s11 = scalar_lea.vmem %s1417_s9, 256  ;;  %p1419_p4 = scmp.lt.s32.totalorder %s1672_s28, %s1417_s9 }
  0x57   : > { %p1414_p2 = pnand %p1412_p12, %p1398_p0  ;;  %p1420_p13 = scmp.lt.s32.totalorder %s1418_s11, %s1411_s29 }
  0x59   : > { %p1415_p7 = pneg %p1414_p2  ;;  %p1421_p6 = por %p1420_p13, %p1419_p4 }
  0x5b   : > { %p1422_p10 = pnand %p1421_p6, %p1415_p7 }
  0x5d   : > { %1425 = shalt.err (!%p1422_p10)
}
  0x5e   : > { %1202 = dma.hbm_to_vmem [thread:$0]  (!%p1674_p11), %s1670_s10, 128, %s1672_s28, %s209_s13  }
  0x5f   : > { %228 = sbr.rel (%p1577_p8) target bundleno = 619 (0x26b), region = 40  ;;  %s1706_s14 = sand.u32 (!%p1577_p8), 1, %s1488_s19  }
  0x60   : > { %s1063_s15 = sshll.u32 (!%p1577_p8), %s1706_s14, 3  ;;  %s231_s17 = scalar_lea.sflag (!%p1577_p8), [#allocation3], %s1706_s14 }
  0x61   : > { %s1712_s23 = scalar_lea.vmem (!%p1577_p8), [#allocation2], %s1063_s15  ;;  %p1795_p4 = scmp.ne.s32.totalorder (!%p1577_p8), %s1788_s24, 0 }
  0x66   : > { %1471 = dma.done.wait (%p1795_p4), %s231_s17, 128  }
  0x67   : > { %1473 = vsyncadd (%p1795_p4), %s231_s17, 4294967168  ;;  %p1796_p7 = scmp.eq.s32.totalorder %s1558_s22, 0 }
  0x69   : > { %1475 = dma.done.wait (%p1796_p7), [#allocation6], 8192   ;;  %p1797_p8 = pmov %p1796_p7 }
  0x6a   : > { %v1505_v0 = vmov 0   ;;  %v1252_v1 = vld [vmem:[#allocation5 + $0x4] ss:$16 sps:$4 sm:$0xff]   ;;  %v1254_v2 = vld [vmem:[#allocation5 + $0xc] ss:$16 sps:$4 sm:$0xff]   ;;  %s1133_s12 = sshll.u32 %s1558_s22, 7 }
  0x6b   : > { %1477 = vsyncadd (%p1797_p8), [#allocation6], 4294959104  ;;  %518 = vmatprep.mubr.bf16.mxu0 %v1505_v0  ;;  %559 = vmatprep.mubr.bf16.mxu1 %v1505_v0  ;;  %v1256_v3 = vld [vmem:[#allocation5] ss:$16 sps:$4 sm:$0xff]   ;;  %v1257_v4 = vld [vmem:[#allocation5 + $0x8] ss:$16 sps:$4 sm:$0xff]   ;;  %s1735_s8 = scalar_lea.hbm %s1784_s5, %s1133_s12 }
  0x6c   : > { %486 = vmatprep.subr.bf16.mxu0 %v1252_v1  ;;  %527 = vmatprep.subr.bf16.mxu1 %v1254_v2  ;;  %v1258_v5 = vld [vmem:[#allocation5 + $0x24] ss:$16 sps:$4 sm:$0xff]   ;;  %v1260_v6 = vld [vmem:[#allocation5 + $0x2c] ss:$16 sps:$4 sm:$0xff]   ;;  %v1262_v7 = vld [vmem:[#allocation5 + $0x20] ss:$16 sps:$4 sm:$0xff]  }
  0x6d   : > { %487 = vmatpush1.bf16.msra.mxu0 %v1256_v3  ;;  %528 = vmatpush1.bf16.msra.mxu1 %v1257_v4  ;;  %v1263_v8 = vld [vmem:[#allocation5 + $0x28] ss:$16 sps:$4 sm:$0xff]   ;;  %v1264_v9 = vld [vmem:[#allocation5 + $0x44] ss:$16 sps:$4 sm:$0xff]   ;;  %v1266_v10 = vld [vmem:[#allocation5 + $0x4c] ss:$16 sps:$4 sm:$0xff]   ;;  %v306_v3 = vlaneseq }
  0x6e   : > { %488 = vmatprep.subr.bf16.mxu0 %v1258_v5  ;;  %529 = vmatprep.subr.bf16.mxu1 %v1260_v6  ;;  %v1268_v11 = vld [vmem:[#allocation5 + $0x40] ss:$16 sps:$4 sm:$0xff]   ;;  %v1269_v12 = vld [vmem:[#allocation5 + $0x48] ss:$16 sps:$4 sm:$0xff]   ;;  %v1270_v13 = vld [vmem:[#allocation5 + $0x64] ss:$16 sps:$4 sm:$0xff]  }
  0x6f   : > { %v1272_v14 = vld [vmem:[#allocation5 + $0x6c] ss:$16 sps:$4 sm:$0xff]   ;;  %v1274_v15 = vld [vmem:[#allocation5 + $0x60] ss:$16 sps:$4 sm:$0xff]   ;;  %v1275_v16 = vld [vmem:[#allocation5 + $0x68] ss:$16 sps:$4 sm:$0xff]  }
  0x70   : > { %v1276_v17 = vld [vmem:[#allocation5 + $0x84] ss:$16 sps:$4 sm:$0xff]   ;;  %v1278_v18 = vld [vmem:[#allocation5 + $0x8c] ss:$16 sps:$4 sm:$0xff]   ;;  %v1280_v19 = vld [vmem:[#allocation5 + $0x80] ss:$16 sps:$4 sm:$0xff]  }
  0x71   : > { %489 = vmatpush1.bf16.msra.mxu0 %v1262_v7  ;;  %530 = vmatpush1.bf16.msra.mxu1 %v1263_v8  ;;  %v1281_v20 = vld [vmem:[#allocation5 + $0x88] ss:$16 sps:$4 sm:$0xff]   ;;  %v1282_v21 = vld [vmem:[#allocation5 + $0xa4] ss:$16 sps:$4 sm:$0xff]   ;;  %v1284_v22 = vld [vmem:[#allocation5 + $0xac] ss:$16 sps:$4 sm:$0xff]  }
  0x72   : > { %490 = vmatprep.subr.bf16.mxu0 %v1264_v9  ;;  %531 = vmatprep.subr.bf16.mxu1 %v1266_v10  ;;  %v1286_v23 = vld [vmem:[#allocation5 + $0xa0] ss:$16 sps:$4 sm:$0xff]   ;;  %v1287_v24 = vld [vmem:[#allocation5 + $0xa8] ss:$16 sps:$4 sm:$0xff]   ;;  %v1288_v25 = vld [vmem:[#allocation5 + $0xc4] ss:$16 sps:$4 sm:$0xff]  }
  0x73   : > { %v1290_v26 = vld [vmem:[#allocation5 + $0xcc] ss:$16 sps:$4 sm:$0xff]   ;;  %v1292_v27 = vld [vmem:[#allocation5 + $0xc0] ss:$16 sps:$4 sm:$0xff]   ;;  %v1293_v28 = vld [vmem:[#allocation5 + $0xc8] ss:$16 sps:$4 sm:$0xff]  }
  0x74   : > { %v1294_v29 = vld [vmem:[#allocation5 + $0xe4] ss:$16 sps:$4 sm:$0xff]   ;;  %v1296_v30 = vld [vmem:[#allocation5 + $0xec] ss:$16 sps:$4 sm:$0xff]   ;;  %v1298_v31 = vld [vmem:[#allocation5 + $0xe0] ss:$16 sps:$4 sm:$0xff]  }
  0x75   : > { %491 = vmatpush1.bf16.msra.mxu0 %v1268_v11  ;;  %532 = vmatpush1.bf16.msra.mxu1 %v1269_v12  ;;  %v1299_v32 = vld [vmem:[#allocation5 + $0xe8] ss:$16 sps:$4 sm:$0xff]   ;;  %v1300_v35 = vld [vmem:[#allocation7 + $0x40] sm:$0xff]   ;;  %v1308_v43 = vld [vmem:[#allocation7 + $0x50] sm:$0xff]   ;;  %v307_v4 = vshrl.u32 %v306_v3, 7  ;;  %s268_s13 = scalar_lea.vmem [#allocation8], %s1063_s15 }
  0x76   : > { %492 = vmatprep.subr.bf16.mxu0 %v1270_v13  ;;  %533 = vmatprep.subr.bf16.mxu1 %v1272_v14  ;;  %v270_v33 = vld [vmem:[%s1712_s23] sm:$0xff]  ;;  %v1301_v36 = vld [vmem:[#allocation7 + $0xc0] sm:$0xff]   ;;  %v1304_v39 = vld [vmem:[#allocation7 + $0x48] sm:$0xff]   ;;  %s966_s7 = sshll.u32 %s268_s13, 4  ;;  %s953_s9 = scalar_lea.sflag [#allocation4], %s1706_s14  ;;  %s1737_s7 = int_to_ptr.vmem [resolvable:$true] %s966_s7 }
  0x77   : > { %v271_v34 = vpack.c.bf16 %v270_v33, %v270_v33  ;;  %v1302_v37 = vld [vmem:[#allocation7] sm:$0xff]   ;;  %v1305_v40 = vld [vmem:[#allocation7 + $0xc8] sm:$0xff]   ;;  %v1309_v44 = vld [vmem:[#allocation7 + $0xd0] sm:$0xff]   ;;  %v308_v5 = vsub.s32 0, %v307_v4  ;;  %v316_v6 = vsub.s32 2, %v307_v4  ;;  %v312_v8 = vsub.s32 1, %v307_v4 }
  0x78   : > { %v1303_v38 = vld [vmem:[#allocation7 + $0x80] sm:$0xff]   ;;  %v1306_v41 = vld [vmem:[#allocation7 + $0x8] sm:$0xff]   ;;  %v1310_v45 = vld [vmem:[#allocation7 + $0x10] sm:$0xff]   ;;  %v320_v9 = vsub.s32 3, %v307_v4  ;;  %s1426_s11 = scalar_lea.vmem %s1737_s7, 128  ;;  %p1798_p0 = scmp.ne.s32.totalorder %s1793_s30, 0 }
  0x79   : > { %493 = vmatpush1.bf16.msra.mxu0 %v1274_v15  ;;  %534 = vmatpush1.bf16.msra.mxu1 %v1275_v16  ;;  %v1307_v42 = vld [vmem:[#allocation7 + $0x88] sm:$0xff]   ;;  %v1311_v46 = vld [vmem:[#allocation7 + $0x90] sm:$0xff]   ;;  %v1312_v47 = vld [vmem:[#allocation7 + $0x58] sm:$0xff]   ;;  %p1427_p11 = scmp.ne.s32.totalorder %s1737_s7, %s1426_s11  ;;  %s1506_s22 = smov [#allocation8]  }
  0x7a   : > { %494 = vmatprep.subr.bf16.mxu0 %v1276_v17  ;;  %535 = vmatprep.subr.bf16.mxu1 %v1278_v18  ;;  %v1313_v48 = vld [vmem:[#allocation7 + $0xd8] sm:$0xff]   ;;  %v1316_v51 = vld [vmem:[#allocation7 + $0x60] sm:$0xff]   ;;  %v1320_v55 = vld [vmem:[#allocation7 + $0x68] sm:$0xff]   ;;  %s1430_s15 = sshll.u32 %s1506_s22, 4  ;;  %s1431_s15 = int_to_ptr.vmem [resolvable:$false] %s1430_s15 }
  0x7b   : > { %v1314_v49 = vld [vmem:[#allocation7 + $0x18] sm:$0xff]   ;;  %v1317_v52 = vld [vmem:[#allocation7 + $0xe0] sm:$0xff]   ;;  %v1321_v56 = vld [vmem:[#allocation7 + $0xe8] sm:$0xff]   ;;  %p1428_p1 = pnand %p1427_p11, %p1798_p0  ;;  %s1432_s17 = scalar_lea.vmem %s1431_s15, 256 }
  0x7c   : > { %v1315_v50 = vld [vmem:[#allocation7 + $0x98] sm:$0xff]   ;;  %v1318_v53 = vld [vmem:[#allocation7 + $0x20] sm:$0xff]   ;;  %v1322_v57 = vld [vmem:[#allocation7 + $0x28] sm:$0xff]   ;;  %p1433_p5 = scmp.lt.s32.totalorder %s1737_s7, %s1431_s15  ;;  %p1434_p9 = scmp.lt.s32.totalorder %s1432_s17, %s1426_s11 }
  0x7d   : > { %495 = vmatpush1.bf16.msra.mxu0 %v1280_v19  ;;  %536 = vmatpush1.bf16.msra.mxu1 %v1281_v20  ;;  %v1319_v54 = vld [vmem:[#allocation7 + $0xa0] sm:$0xff]   ;;  %v1323_v58 = vld [vmem:[#allocation7 + $0xa8] sm:$0xff]   ;;  %v1324_v59 = vld [vmem:[#allocation7 + $0x70] sm:$0xff]   ;;  %p1429_p3 = pneg %p1428_p1 }
  0x7e   : > { %496 = vmatprep.subr.bf16.mxu0 %v1282_v21  ;;  %537 = vmatprep.subr.bf16.mxu1 %v1284_v22  ;;  %v1325_v60 = vld [vmem:[#allocation7 + $0xf0] sm:$0xff]   ;;  %v1328_v63 = vld [vmem:[#allocation7 + $0x78] sm:$0xff]   ;;  %p1435_p12 = por %p1434_p9, %p1433_p5 }
  0x7f   : > { %v1326_v61 = vld [vmem:[#allocation7 + $0x30] sm:$0xff]   ;;  %v1329_v0 = vld [vmem:[#allocation7 + $0xf8] sm:$0xff]  }
  0x80   : > { %v1327_v62 = vld [vmem:[#allocation7 + $0xb0] sm:$0xff]   ;;  %v1330_v1 = vld [vmem:[#allocation7 + $0x38] sm:$0xff]   ;;  %p1436_p2 = pnand %p1435_p12, %p1429_p3 }
  0x81   : > { %497 = vmatpush1.bf16.msra.mxu0 %v1286_v23  ;;  %538 = vmatpush1.bf16.msra.mxu1 %v1287_v24  ;;  %v1331_v2 = vld [vmem:[#allocation7 + $0xb8] sm:$0xff]   ;;  %v304_v7 = vld [vmem:[%s1781_s2] sm:$0xf] }
  0x82   : > { %498 = vmatprep.subr.bf16.mxu0 %v1288_v25  ;;  %539 = vmatprep.subr.bf16.mxu1 %v1290_v26  ;;  %v309_v10 = vrot.slane %v304_v7, %v308_v5  ;;  %v317_v11 = vrot.slane %v304_v7, %v316_v6  ;;  %v313_v12 = vrot.slane %v304_v7, %v312_v8  ;;  %v1099_v4 = vld [vmem:[%s1783_s4] ss:$0 sm:$0xff] }
  0x83   : > { %v321_v13 = vrot.slane %v304_v7, %v320_v9 }
  0x85   : > { %499 = vmatpush1.bf16.msra.mxu0 %v1292_v27  ;;  %540 = vmatpush1.bf16.msra.mxu1 %v1293_v28 }
  0x86   : > { %500 = vmatprep.subr.bf16.mxu0 %v1294_v29  ;;  %541 = vmatprep.subr.bf16.mxu1 %v1296_v30 }
  0x89   : > { %501 = vmatpush1.bf16.msra.mxu0 %v1298_v31  ;;  %542 = vmatpush1.bf16.msra.mxu1 %v1299_v32 }
  0x8a   : > { %1136 = vmatprep.subr.bf16.mxu0 %v1300_v35  ;;  %1158 = vmatprep.subr.bf16.mxu1 %v1301_v36 }
  0x8c   : > { %519 = vmatmul.mubr.bf16.vlgmr.msra.gmra.mrb[0].mxu0 %v271_v34  ;;  %560 = vmatmul.mubr.bf16.vlgmr.msra.gmra.mrb[0].mxu1 %v271_v34 }
  0x8d   : > { %1137 = vmatpush3.bf16.msra.mxu0 %v1302_v37  ;;  %1159 = vmatpush3.bf16.msra.mxu1 %v1303_v38 }
  0x8e   : > { %1138 = vmatprep.subr.bf16.mxu0 %v1304_v39  ;;  %1160 = vmatprep.subr.bf16.mxu1 %v1305_v40 }
  0x91   : > { %1139 = vmatpush3.bf16.msra.mxu0 %v1306_v41  ;;  %1161 = vmatpush3.bf16.msra.mxu1 %v1307_v42 }
  0x92   : > { %1140 = vmatprep.subr.bf16.mxu0 %v1308_v43  ;;  %1162 = vmatprep.subr.bf16.mxu1 %v1309_v44 }
  0x95   : > { %1141 = vmatpush3.bf16.msra.mxu0 %v1310_v45  ;;  %1163 = vmatpush3.bf16.msra.mxu1 %v1311_v46 }
  0x96   : > { %1142 = vmatprep.subr.bf16.mxu0 %v1312_v47  ;;  %1164 = vmatprep.subr.bf16.mxu1 %v1313_v48 }
  0x99   : > { %1143 = vmatpush3.bf16.msra.mxu0 %v1314_v49  ;;  %1165 = vmatpush3.bf16.msra.mxu1 %v1315_v50 }
  0x9a   : > { %1144 = vmatprep.subr.bf16.mxu0 %v1316_v51  ;;  %1166 = vmatprep.subr.bf16.mxu1 %v1317_v52 }
  0x9d   : > { %1145 = vmatpush3.bf16.msra.mxu0 %v1318_v53  ;;  %1167 = vmatpush3.bf16.msra.mxu1 %v1319_v54 }
  0x9e   : > { %1146 = vmatprep.subr.bf16.mxu0 %v1320_v55  ;;  %1168 = vmatprep.subr.bf16.mxu1 %v1321_v56 }
  0xa1   : > { %1147 = vmatpush3.bf16.msra.mxu0 %v1322_v57  ;;  %1169 = vmatpush3.bf16.msra.mxu1 %v1323_v58 }
  0xa2   : > { %1148 = vmatprep.subr.bf16.mxu0 %v1324_v59  ;;  %1170 = vmatprep.subr.bf16.mxu1 %v1325_v60 }
  0xa5   : > { %1149 = vmatpush3.bf16.msra.mxu0 %v1326_v61  ;;  %1171 = vmatpush3.bf16.msra.mxu1 %v1327_v62 }
  0xa6   : > { %1150 = vmatprep.subr.bf16.mxu0 %v1328_v63  ;;  %1172 = vmatprep.subr.bf16.mxu1 %v1329_v0 }
  0xa9   : > { %1151 = vmatpush3.bf16.msra.mxu0 %v1330_v1  ;;  %1173 = vmatpush3.bf16.msra.mxu1 %v1331_v2 }
 0x15f   : > { %v520_v14 = vpop.f32.mrb[0].mxu0  ;;  %v561_v15 = vpop.f32.mrb[0].mxu1 }
 0x160   : > { %v521_v16 = vadd.f32 %v520_v14, %v309_v10  ;;  %v562_v17 = vadd.f32 %v561_v15, %v317_v11  ;;  %v522_v18 = vpop.f32.mrb[1].mxu0  ;;  %v563_v19 = vpop.f32.mrb[1].mxu1 }
 0x161   : > { %v523_v20 = vadd.f32 %v522_v18, %v313_v12  ;;  %v564_v21 = vadd.f32 %v563_v19, %v321_v13  ;;  %v524_v22 = vpop.f32.mrb[2].mxu0  ;;  %v565_v23 = vpop.f32.mrb[2].mxu1 }
 0x162   : > { %v568_v24 = vmul.f32 %v521_v16, %v521_v16  ;;  %v570_v25 = vmul.f32 %v562_v17, %v562_v17  ;;  %v525_v26 = vpop.f32.mrb[3].mxu0  ;;  %v566_v27 = vpop.f32.mrb[3].mxu1 }
 0x163   : > { %v569_v28 = vmul.f32 %v523_v20, %v523_v20  ;;  %v571_v29 = vmul.f32 %v564_v21, %v564_v21 }
 0x164   : > { %v572_v30 = vmul.f32 %v568_v24, %v521_v16  ;;  %v574_v31 = vmul.f32 %v570_v25, %v562_v17 }
 0x165   : > { %v573_v32 = vmul.f32 %v569_v28, %v523_v20  ;;  %v575_v33 = vmul.f32 %v571_v29, %v564_v21 }
 0x166   : > { %v576_v34 = vmul.f32 0.044715, %v572_v30  ;;  %v578_v35 = vmul.f32 0.044715, %v574_v31 }
 0x167   : > { %v577_v36 = vmul.f32 0.044715, %v573_v32  ;;  %v579_v37 = vmul.f32 0.044715, %v575_v33 }
 0x168   : > { %v580_v38 = vadd.f32 %v576_v34, %v521_v16  ;;  %v582_v39 = vadd.f32 %v578_v35, %v562_v17 }
 0x169   : > { %v581_v40 = vadd.f32 %v577_v36, %v523_v20  ;;  %v583_v41 = vadd.f32 %v579_v37, %v564_v21 }
 0x16a   : > { %v584_v42 = vmul.f32 0.7978846, %v580_v38  ;;  %v586_v43 = vmul.f32 0.7978846, %v582_v39 }
 0x16b   : > { %v585_v44 = vmul.f32 0.7978846, %v581_v40  ;;  %v587_v45 = vmul.f32 0.7978846, %v583_v41 }
 0x16c   : > { %1332 = vtanh.f32 %v584_v42 }
 0x16d   : > { %1334 = vtanh.f32 %v586_v43 }
 0x16e   : > { %1336 = vtanh.f32 %v585_v44 }
 0x16f   : > { %1338 = vtanh.f32 %v587_v45 }
 0x176   : > { %v1333_v46 = vpop.eup %1332 }
 0x177   : > { %v1335_v47 = vpop.eup %1334  ;;  %v592_v48 = vadd.f32 1.0, %v1333_v46 }
 0x178   : > { %v1337_v49 = vpop.eup %1336  ;;  %v594_v50 = vadd.f32 1.0, %v1335_v47 }
 0x179   : > { %v1339_v51 = vpop.eup %1338  ;;  %v593_v52 = vadd.f32 1.0, %v1337_v49  ;;  %v596_v53 = vmul.f32 0.5, %v592_v48 }
 0x17a   : > { %v595_v54 = vadd.f32 1.0, %v1339_v51  ;;  %v598_v55 = vmul.f32 0.5, %v594_v50 }
 0x17b   : > { %v597_v56 = vmul.f32 0.5, %v593_v52  ;;  %v600_v58 = vmul.f32 %v596_v53, %v521_v16 }
 0x17c   : > { %v599_v57 = vmul.f32 0.5, %v595_v54  ;;  %v602_v60 = vmul.f32 %v598_v55, %v562_v17 }
 0x17d   : > { %v601_v59 = vmul.f32 %v597_v56, %v523_v20  ;;  %v604_v0 = vpack.c.bf16 %v600_v58, %v600_v58 }
 0x17e   : > { %v603_v61 = vmul.f32 %v599_v57, %v564_v21  ;;  %v606_v1 = vpack.c.bf16 %v602_v60, %v602_v60 }
 0x17f   : > { %v605_v62 = vpack.c.bf16 %v601_v59, %v601_v59 }
 0x180   : > { %v607_v63 = vpack.c.bf16 %v603_v61, %v603_v61 }
 0x181   : > { %903 = vmatprep.mubr.bf16.mxu0 %v605_v62 }
 0x182   : > { %943 = vmatprep.mubr.bf16.mxu1 %v607_v63  ;;  %904 = vmatmul.mubr.bf16.vlgmr.msra.gmra.mrb[4].mxu0 %v604_v0 }
 0x183   : > { %944 = vmatmul.mubr.bf16.vlgmr.msra.gmra.mrb[4].mxu1 %v606_v1 }
 0x255   : > { %v1152_v2 = vpop.f32.mrb[4].mxu0 }
 0x256   : > { %v1174_v3 = vpop.f32.mrb[4].mxu1  ;;  %v1153_v5 = vpop.f32.mrb[5].mxu0 }
 0x257   : > { %v1154_v6 = vadd.f32 %v1153_v5, %v1152_v2  ;;  %v1175_v7 = vpop.f32.mrb[5].mxu1  ;;  %v1155_v8 = vpop.f32.mrb[6].mxu0 }
 0x258   : > { %v1176_v9 = vadd.f32 %v1175_v7, %v1174_v3  ;;  %v1177_v10 = vpop.f32.mrb[6].mxu1  ;;  %v1156_v11 = vpop.f32.mrb[7].mxu0 }
 0x259   : > { %v906_v12 = vadd.f32 %v1154_v6, %v1099_v4  ;;  %v1178_v13 = vpop.f32.mrb[7].mxu1 }
 0x25b   : > { %v946_v14 = vadd.f32 %v1176_v9, %v906_v12 }
 0x25d   : > { %951 = vst [vmem:[%s268_s13] sm:$0xff] %v946_v14 }
 0x25e   : > { %1439 = shalt.err (!%p1436_p2)
}
 0x25f   : > { %s1440_s14 = scalar_lea.hbm %s1735_s8, 128  ;;  %s1444_s26 = scalar_lea.hbm %s1784_s5, 256 }
 0x260   : > { %p1441_p13 = scmp.ne.s32.totalorder %s1735_s8, %s1440_s14  ;;  %p1445_p4 = scmp.lt.u32.totalorder %s1735_s8, %s1784_s5 }
 0x261   : > { %p1446_p7 = scmp.lt.u32.totalorder %s1444_s26, %s1440_s14  ;;  %p1448_p11 = scmp.lt.u32.totalorder %s1440_s14, %s1735_s8 }
 0x262   : > { %p1442_p6 = pnand %p1441_p13, %p1798_p0 }
 0x263   : > { %p1447_p8 = por %p1446_p7, %p1445_p4 }
 0x264   : > { %p1443_p10 = pneg %p1442_p6 }
 0x265   : > { %p1449_p1 = por %p1448_p11, %p1447_p8 }
 0x267   : > { %p1450_p3 = pnand %p1449_p1, %p1443_p10 }
 0x269   : > { %1453 = shalt.err (!%p1450_p3)
}
 0x26a   : > { %1190 = dma.vmem_to_hbm [thread:$0]  (%p1798_p0), %s1737_s7, 128, %s1735_s8, %s953_s9  }
 0x26b PF: > { %s978_s12 = sand.u32 1, %s1484_s18   ;;  %p1799_p5 = scmp.ne.s32.totalorder %s1789_s25, 0 }
 0x26c   : > { %p1800_p9 = scmp.ge.s32.totalorder %s1496_s21, 2  ;;  %s979_s13 = scalar_lea.sflag [#allocation4], %s978_s12 }
 0x26e   : > { %p1204_p12 = pnand %p1800_p9, %p1799_p5 }
 0x270   : > { %1479 = dma.done.wait (!%p1204_p12), %s979_s13, 128  }
 0x271   : > { %1481 = vsyncadd (!%p1204_p12), %s979_s13, 4294967168  ;;  %p19_p2 = scmp.ge.s32.totalorder %s1647_s16, 4   ;;  %s1801_s18 = smov %s1488_s19 }
 0x272   : > { %s1802_s19 = smov %s1492_s20  ;;  %s1803_s20 = smov %s1656_s27 }
 0x273   : > { %s1804_s21 = smov %s1647_s16  ;;  %21 = sbr.rel (!%p19_p2) target bundleno = 6 (0x6), region = 93 }
 0x27a   :  { %984 = vsyncpa [#allocation3], 1 }
 0x27b   :  { %986 = vsyncpa [#allocation3 + $0x1], 1 }
 0x27c   :  { %987 = vsyncpa [#allocation6], 1 }
 0x27d   :  { %988 = vsyncpa [#allocation4], 1 }
 0x27e   :  { %990 = vsyncpa [#allocation4 + $0x1], 1 }

</bundles_post_ra>
